<compile_context>
chip_gen: v5e
topology: v5e:2x2
jax: 0.10.0
libtpu: 0.0.40
codegen_flags: <defaults>
</compile_context>

<pallas_src>
import math
from functools import partial

import jax
import jax.numpy as jnp
from jax.experimental import pallas as pl
from jax.experimental.pallas import tpu as pltpu


# ----------------------------- kernel helpers -------------------------------

def _layernorm(x, gamma, beta, eps=1e-5):
    mean = jnp.mean(x, axis=-1, keepdims=True)
    var = jnp.mean((x - mean) ** 2, axis=-1, keepdims=True)
    return (x - mean) * jax.lax.rsqrt(var + eps) * gamma + beta


def _gelu_exact(x):
    # torch nn.GELU() default = exact erf-based GELU
    return 0.5 * x * (1.0 + jax.lax.erf(x * (1.0 / math.sqrt(2.0))))


# ------------------------------- the kernel ---------------------------------

def encoder_block_kernel(num_heads,
                         q_ref, k_ref, v_ref, mask_ref,
                         wq_ref, wk_ref, wv_ref, bq_ref, bk_ref, bv_ref,
                         wo_ref, bo_ref,
                         w1_ref, b1_ref, w2_ref, b2_ref,
                         g1_ref, be1_ref, g2_ref, be2_ref,
                         outq_ref, outw_ref):
    TB, S, D = q_ref.shape
    H = num_heads
    dh = D // H
    scale = 1.0 / math.sqrt(dh)
    mm_dtype = wq_ref.dtype          # weights pre-cast (bf16) in the wrapper

    mask = mask_ref[...]             # (S, S) additive float mask, f32

    # ---- flatten the batch tile: (TB, S, D) -> (TB*S, D) so every projection /
    #      FFN matmul is one MXU call with a dense M dimension.
    q2 = q_ref[...].reshape(TB * S, D)
    k2 = k_ref[...].reshape(TB * S, D)
    v2 = v_ref[...].reshape(TB * S, D)

    def mm(x, w_ref, b_ref):
        # weights are pre-transposed in the wrapper -> plain x @ W (no in-kernel .T)
        return jnp.dot(x.astype(mm_dtype), w_ref[...],
                       preferred_element_type=jnp.float32) + b_ref[...]

    qp = mm(q2, wq_ref, bq_ref)      # (TB*S, D) f32
    kp = mm(k2, wk_ref, bk_ref)
    vp = mm(v2, wv_ref, bv_ref)

    # ---- multi-head attention: all heads fused into one batched MXU matmul
    #      per batch element (no per-head micro-matmuls, no lane-dim concat).
    ctx_rows = []
    for b in range(TB):              # static, small unrolled loop over the batch tile
        lo = b * S
        qh = jnp.transpose(qp[lo:lo + S, :].reshape(S, H, dh), (1, 0, 2))  # (H, S, dh)
        kh = jnp.transpose(kp[lo:lo + S, :].reshape(S, H, dh), (1, 0, 2))
        vh = jnp.transpose(vp[lo:lo + S, :].reshape(S, H, dh), (1, 0, 2))

        logits = jnp.einsum("hqd,hkd->hqk",
                            qh.astype(mm_dtype), kh.astype(mm_dtype),
                            preferred_element_type=jnp.float32)
        logits = logits * scale + mask[None]                 # (H, S, S) f32
        logits = logits - jnp.max(logits, axis=-1, keepdims=True)
        ex = jnp.exp(logits)
        denom = jnp.sum(ex, axis=-1, keepdims=True)
        p = ex * pl.reciprocal(denom, approx=True)           # softmax, (H, S, S)

        ctx = jnp.einsum("hqk,hkd->hqd",
                         p.astype(mm_dtype), vh.astype(mm_dtype),
                         preferred_element_type=jnp.float32)  # (H, S, dh)
        ctx_rows.append(jnp.transpose(ctx, (1, 0, 2)).reshape(S, D))

        # torch returns head-averaged attention weights
        outw_ref[b] = jnp.mean(p, axis=0).astype(outw_ref.dtype)

    attn = ctx_rows[0] if TB == 1 else jnp.concatenate(ctx_rows, axis=0)  # (TB*S, D)

    # ---- output projection + residual + norm1 ----
    attn_out = mm(attn, wo_ref, bo_ref)
    x1 = _layernorm(q2 + attn_out, g1_ref[...], be1_ref[...])

    # ---- feed-forward (Linear -> GELU -> Linear) + residual + norm2 ----
    h1 = _gelu_exact(mm(x1, w1_ref, b1_ref))
    ff = mm(h1, w2_ref, b2_ref)
    x2 = _layernorm(x1 + ff, g2_ref[...], be2_ref[...])

    outq_ref[...] = x2.reshape(TB, S, D).astype(outq_ref.dtype)


# ------------------------------ python wrapper -------------------------------

def encoder_block(q, k, v, mask, params, num_heads,
                  *, batch_tile=None, matmul_dtype=jnp.bfloat16):
    B, S, D = q.shape
    FF = params["w1"].shape[0]

    # Fold multiple batch elements per grid step so matmul M-dims / output tiles are
    # sublane-dense (target TB*S >= 128 rows when B allows).
    if batch_tile is None:
        target = max(1, (128 + S - 1) // S)
        batch_tile = 1
        for t in range(1, B + 1):
            if B % t == 0 and t <= target:
                batch_tile = t
    TB = batch_tile
    assert B % TB == 0, "batch_tile must divide batch"
    grid = (B // TB,)

    wd = matmul_dtype
    # One-time pre-transpose + cast of all weight matrices (hoisted out of the kernel).
    wq_t = params["wq"].T.astype(wd)
    wk_t = params["wk"].T.astype(wd)
    wv_t = params["wv"].T.astype(wd)
    wo_t = params["wo"].T.astype(wd)
    w1_t = params["w1"].T.astype(wd)      # (D, FF)
    w2_t = params["w2"].T.astype(wd)      # (FF, D)

    x_spec = pl.BlockSpec((TB, S, D), lambda b: (b, 0, 0))

    def w_spec(r, c):
        return pl.BlockSpec((r, c), lambda b: (0, 0))

    kernel = partial(encoder_block_kernel, num_heads)

    out_q, out_w = pl.pallas_call(
        kernel,
        out_shape=(
            jax.ShapeDtypeStruct((B, S, D), q.dtype),
            jax.ShapeDtypeStruct((B, S, S), jnp.float32),
        ),
        grid_spec=pltpu.PrefetchScalarGridSpec(
            num_scalar_prefetch=0,
            grid=grid,
            in_specs=[
                x_spec, x_spec, x_spec,                     # q, k, v
                w_spec(S, S),                               # mask
                w_spec(D, D), w_spec(D, D), w_spec(D, D),   # wq^T, wk^T, wv^T
                w_spec(1, D), w_spec(1, D), w_spec(1, D),   # bq, bk, bv
                w_spec(D, D), w_spec(1, D),                 # wo^T, bo
                w_spec(D, FF), w_spec(1, FF),               # w1^T, b1
                w_spec(FF, D), w_spec(1, D),                # w2^T, b2
                w_spec(1, D), w_spec(1, D),                 # norm1 gamma, beta
                w_spec(1, D), w_spec(1, D),                 # norm2 gamma, beta
            ],
            out_specs=[
                pl.BlockSpec((TB, S, D), lambda b: (b, 0, 0)),
                pl.BlockSpec((TB, S, S), lambda b: (b, 0, 0)),
            ],
        ),
        compiler_params=pltpu.CompilerParams(dimension_semantics=("parallel",)),
    )(q, k, v, mask,
      wq_t, wk_t, wv_t,
      params["bq"], params["bk"], params["bv"],
      wo_t, params["bo"],
      w1_t, params["b1"], w2_t, params["b2"],
      params["g1"], params["beta1"], params["g2"], params["beta2"])

    # Module returns ((q, k, v), mask, weights); k, v and mask pass through untouched.
    return (out_q, k, v), mask, out_w


# ------------------------------ pure-JAX reference ---------------------------

def encoder_block_ref(q, k, v, mask, params, num_heads):
    B, S, D = q.shape
    dh = D // num_heads

    def proj(x, w, b):
        return jnp.einsum("bsd,ed->bse", x, w) + b

    qp = proj(q, params["wq"], params["bq"])
    kp = proj(k, params["wk"], params["bk"])
    vp = proj(v, params["wv"], params["bv"])

    qh = qp.reshape(B, S, num_heads, dh).transpose(0, 2, 1, 3)
    kh = kp.reshape(B, S, num_heads, dh).transpose(0, 2, 1, 3)
    vh = vp.reshape(B, S, num_heads, dh).transpose(0, 2, 1, 3)

    logits = jnp.einsum("bhqd,bhkd->bhqk", qh, kh) / math.sqrt(dh) + mask
    p = jax.nn.softmax(logits, axis=-1)
    attn = jnp.einsum("bhqk,bhkd->bhqd", p, vh).transpose(0, 2, 1, 3).reshape(B, S, D)
    attn_out = jnp.einsum("bsd,ed->bse", attn, params["wo"]) + params["bo"]

    def ln(x, g, b, eps=1e-5):
        m = jnp.mean(x, -1, keepdims=True)
        vv = jnp.mean((x - m) ** 2, -1, keepdims=True)
        return (x - m) / jnp.sqrt(vv + eps) * g + b

    x1 = ln(q + attn_out, params["g1"], params["beta1"])
    h1 = jax.nn.gelu(jnp.einsum("bsd,fd->bsf", x1, params["w1"]) + params["b1"],
                     approximate=False)
    ff = jnp.einsum("bsf,df->bsd", h1, params["w2"]) + params["b2"]
    x2 = ln(x1 + ff, params["g2"], params["beta2"])
    return x2, p.mean(axis=1)


# ----------------------------------- main ------------------------------------

if __name__ == "__main__":
    B, S, D, H, FF = 2, 8, 32, 4, 64

    key = jax.random.PRNGKey(0)
    keys = jax.random.split(key, 16)

    q = jax.random.normal(keys[0], (B, S, D), jnp.float32)
    k = jax.random.normal(keys[1], (B, S, D), jnp.float32)
    v = jax.random.normal(keys[2], (B, S, D), jnp.float32)
    mask = 0.1 * jax.random.normal(keys[3], (S, S), jnp.float32)  # additive float mask

    s = 0.1
    params = {
        # MultiheadAttention in_proj (3D, D) split into per-q/k/v (D, D) weights
        "wq": s * jax.random.normal(keys[4], (D, D), jnp.float32),
        "wk": s * jax.random.normal(keys[5], (D, D), jnp.float32),
        "wv": s * jax.random.normal(keys[6], (D, D), jnp.float32),
        "bq": s * jax.random.normal(keys[7], (1, D), jnp.float32),
        "bk": s * jax.random.normal(keys[8], (1, D), jnp.float32),
        "bv": s * jax.random.normal(keys[9], (1, D), jnp.float32),
        # out_proj
        "wo": s * jax.random.normal(keys[10], (D, D), jnp.float32),
        "bo": s * jax.random.normal(keys[11], (1, D), jnp.float32),
        # linear_net: Linear(D, FF) -> GELU -> Linear(FF, D)
        "w1": s * jax.random.normal(keys[12], (FF, D), jnp.float32),
        "b1": s * jax.random.normal(keys[13], (1, FF), jnp.float32),
        "w2": s * jax.random.normal(keys[14], (D, FF), jnp.float32),
        "b2": s * jax.random.normal(keys[15], (1, D), jnp.float32),
        # LayerNorms (elementwise affine)
        "g1": jnp.ones((1, D), jnp.float32),
        "beta1": jnp.zeros((1, D), jnp.float32),
        "g2": jnp.ones((1, D), jnp.float32),
        "beta2": jnp.zeros((1, D), jnp.float32),
    }

    (q_out, k_out, v_out), mask_out, weights = encoder_block(q, k, v, mask, params, H)
    jax.block_until_ready(q_out)
    jax.block_until_ready(weights)

    # sanity check against the pure-JAX (f32) reference; tolerances account for the
    # bf16 MXU operands used in the kernel.
    q_ref, w_ref = encoder_block_ref(q, k, v, mask, params, H)
    assert jnp.allclose(q_out, q_ref, rtol=2e-2, atol=2e-2), "q mismatch"
    assert jnp.allclose(weights, w_ref, rtol=2e-2, atol=2e-2), "attn weights mismatch"

    print("KERNEL_OK")
</pallas_src>

<mosaic_0001>
module attributes {stable_mosaic.version = 11 : i64} {
  func.func @encoder_block_kernel(%arg0: i32, %arg1: memref<2x8x32xf32, #tpu.memory_space<vmem>>, %arg2: memref<2x8x32xf32, #tpu.memory_space<vmem>>, %arg3: memref<2x8x32xf32, #tpu.memory_space<vmem>>, %arg4: memref<8x8xf32, #tpu.memory_space<vmem>>, %arg5: memref<32x32xbf16, #tpu.memory_space<vmem>>, %arg6: memref<32x32xbf16, #tpu.memory_space<vmem>>, %arg7: memref<32x32xbf16, #tpu.memory_space<vmem>>, %arg8: memref<1x32xf32, #tpu.memory_space<vmem>>, %arg9: memref<1x32xf32, #tpu.memory_space<vmem>>, %arg10: memref<1x32xf32, #tpu.memory_space<vmem>>, %arg11: memref<32x32xbf16, #tpu.memory_space<vmem>>, %arg12: memref<1x32xf32, #tpu.memory_space<vmem>>, %arg13: memref<32x64xbf16, #tpu.memory_space<vmem>>, %arg14: memref<1x64xf32, #tpu.memory_space<vmem>>, %arg15: memref<64x32xbf16, #tpu.memory_space<vmem>>, %arg16: memref<1x32xf32, #tpu.memory_space<vmem>>, %arg17: memref<1x32xf32, #tpu.memory_space<vmem>>, %arg18: memref<1x32xf32, #tpu.memory_space<vmem>>, %arg19: memref<1x32xf32, #tpu.memory_space<vmem>>, %arg20: memref<1x32xf32, #tpu.memory_space<vmem>>, %arg21: memref<2x8x32xf32, #tpu.memory_space<vmem>>, %arg22: memref<2x8x8xf32, #tpu.memory_space<vmem>>) attributes {dimension_semantics = [#tpu.dimension_semantics<parallel>], iteration_bounds = array<i64: 1>, scalar_prefetch = 0 : i64, scratch_operands = 0 : i64, tpu.core_type = #tpu.core_type<tc>, window_params = [{transform_indices = @transform_0, window_bounds = array<i64: 2, 8, 32>}, {transform_indices = @transform_1, window_bounds = array<i64: 2, 8, 32>}, {transform_indices = @transform_2, window_bounds = array<i64: 2, 8, 32>}, {pipeline_mode = #tpu.pipeline_mode<synchronous>, transform_indices = @transform_3, window_bounds = array<i64: 8, 8>}, {pipeline_mode = #tpu.pipeline_mode<synchronous>, transform_indices = @transform_4, window_bounds = array<i64: 32, 32>}, {pipeline_mode = #tpu.pipeline_mode<synchronous>, transform_indices = @transform_5, window_bounds = array<i64: 32, 32>}, {pipeline_mode = #tpu.pipeline_mode<synchronous>, transform_indices = @transform_6, window_bounds = array<i64: 32, 32>}, {pipeline_mode = #tpu.pipeline_mode<synchronous>, transform_indices = @transform_7, window_bounds = array<i64: 1, 32>}, {pipeline_mode = #tpu.pipeline_mode<synchronous>, transform_indices = @transform_8, window_bounds = array<i64: 1, 32>}, {pipeline_mode = #tpu.pipeline_mode<synchronous>, transform_indices = @transform_9, window_bounds = array<i64: 1, 32>}, {pipeline_mode = #tpu.pipeline_mode<synchronous>, transform_indices = @transform_10, window_bounds = array<i64: 32, 32>}, {pipeline_mode = #tpu.pipeline_mode<synchronous>, transform_indices = @transform_11, window_bounds = array<i64: 1, 32>}, {pipeline_mode = #tpu.pipeline_mode<synchronous>, transform_indices = @transform_12, window_bounds = array<i64: 32, 64>}, {pipeline_mode = #tpu.pipeline_mode<synchronous>, transform_indices = @transform_13, window_bounds = array<i64: 1, 64>}, {pipeline_mode = #tpu.pipeline_mode<synchronous>, transform_indices = @transform_14, window_bounds = array<i64: 64, 32>}, {pipeline_mode = #tpu.pipeline_mode<synchronous>, transform_indices = @transform_15, window_bounds = array<i64: 1, 32>}, {pipeline_mode = #tpu.pipeline_mode<synchronous>, transform_indices = @transform_16, window_bounds = array<i64: 1, 32>}, {pipeline_mode = #tpu.pipeline_mode<synchronous>, transform_indices = @transform_17, window_bounds = array<i64: 1, 32>}, {pipeline_mode = #tpu.pipeline_mode<synchronous>, transform_indices = @transform_18, window_bounds = array<i64: 1, 32>}, {pipeline_mode = #tpu.pipeline_mode<synchronous>, transform_indices = @transform_19, window_bounds = array<i64: 1, 32>}, {transform_indices = @transform_20, window_bounds = array<i64: 2, 8, 32>}, {transform_indices = @transform_21, window_bounds = array<i64: 2, 8, 8>}]} {
    %c0 = arith.constant 0 : index
    %c0_0 = arith.constant 0 : index
    %0 = vector.load %arg4[%c0, %c0_0] : memref<8x8xf32, #tpu.memory_space<vmem>>, vector<8x8xf32>
    %c0_1 = arith.constant 0 : index
    %c0_2 = arith.constant 0 : index
    %c0_3 = arith.constant 0 : index
    %1 = vector.load %arg1[%c0_1, %c0_2, %c0_3] : memref<2x8x32xf32, #tpu.memory_space<vmem>>, vector<2x8x32xf32>
    %2 = vector.shape_cast %1 : vector<2x8x32xf32> to vector<16x32xf32>
    %c0_4 = arith.constant 0 : index
    %c0_5 = arith.constant 0 : index
    %c0_6 = arith.constant 0 : index
    %3 = vector.load %arg2[%c0_4, %c0_5, %c0_6] : memref<2x8x32xf32, #tpu.memory_space<vmem>>, vector<2x8x32xf32>
    %4 = vector.shape_cast %3 : vector<2x8x32xf32> to vector<16x32xf32>
    %c0_7 = arith.constant 0 : index
    %c0_8 = arith.constant 0 : index
    %c0_9 = arith.constant 0 : index
    %5 = vector.load %arg3[%c0_7, %c0_8, %c0_9] : memref<2x8x32xf32, #tpu.memory_space<vmem>>, vector<2x8x32xf32>
    %6 = vector.shape_cast %5 : vector<2x8x32xf32> to vector<16x32xf32>
    %7 = arith.truncf %2 : vector<16x32xf32> to vector<16x32xbf16>
    %c0_10 = arith.constant 0 : index
    %c0_11 = arith.constant 0 : index
    %8 = vector.load %arg5[%c0_10, %c0_11] : memref<32x32xbf16, #tpu.memory_space<vmem>>, vector<32x32xbf16>
    %cst = arith.constant dense<0.000000e+00> : vector<16x32xf32>
    %9 = tpu.matmul %7, %8, %cst {dimension_numbers = #tpu.dot_dimension_numbers<[1], [0], [0], [1], [0, 0, 1, 1], [], []>} : vector<16x32xbf16>, vector<32x32xbf16>, vector<16x32xf32> -> vector<16x32xf32>
    %c0_12 = arith.constant 0 : index
    %c0_13 = arith.constant 0 : index
    %10 = vector.load %arg8[%c0_12, %c0_13] : memref<1x32xf32, #tpu.memory_space<vmem>>, vector<1x32xf32>
    %11 = vector.broadcast %10 : vector<1x32xf32> to vector<16x32xf32>
    %12 = arith.addf %9, %11 : vector<16x32xf32>
    %13 = arith.truncf %4 : vector<16x32xf32> to vector<16x32xbf16>
    %c0_14 = arith.constant 0 : index
    %c0_15 = arith.constant 0 : index
    %14 = vector.load %arg6[%c0_14, %c0_15] : memref<32x32xbf16, #tpu.memory_space<vmem>>, vector<32x32xbf16>
    %cst_16 = arith.constant dense<0.000000e+00> : vector<16x32xf32>
    %15 = tpu.matmul %13, %14, %cst_16 {dimension_numbers = #tpu.dot_dimension_numbers<[1], [0], [0], [1], [0, 0, 1, 1], [], []>} : vector<16x32xbf16>, vector<32x32xbf16>, vector<16x32xf32> -> vector<16x32xf32>
    %c0_17 = arith.constant 0 : index
    %c0_18 = arith.constant 0 : index
    %16 = vector.load %arg9[%c0_17, %c0_18] : memref<1x32xf32, #tpu.memory_space<vmem>>, vector<1x32xf32>
    %17 = vector.broadcast %16 : vector<1x32xf32> to vector<16x32xf32>
    %18 = arith.addf %15, %17 : vector<16x32xf32>
    %19 = arith.truncf %6 : vector<16x32xf32> to vector<16x32xbf16>
    %c0_19 = arith.constant 0 : index
    %c0_20 = arith.constant 0 : index
    %20 = vector.load %arg7[%c0_19, %c0_20] : memref<32x32xbf16, #tpu.memory_space<vmem>>, vector<32x32xbf16>
    %cst_21 = arith.constant dense<0.000000e+00> : vector<16x32xf32>
    %21 = tpu.matmul %19, %20, %cst_21 {dimension_numbers = #tpu.dot_dimension_numbers<[1], [0], [0], [1], [0, 0, 1, 1], [], []>} : vector<16x32xbf16>, vector<32x32xbf16>, vector<16x32xf32> -> vector<16x32xf32>
    %c0_22 = arith.constant 0 : index
    %c0_23 = arith.constant 0 : index
    %22 = vector.load %arg10[%c0_22, %c0_23] : memref<1x32xf32, #tpu.memory_space<vmem>>, vector<1x32xf32>
    %23 = vector.broadcast %22 : vector<1x32xf32> to vector<16x32xf32>
    %24 = arith.addf %21, %23 : vector<16x32xf32>
    %25 = vector.extract_strided_slice %12 {offsets = [0, 0], sizes = [8, 32], strides = [1, 1]} : vector<16x32xf32> to vector<8x32xf32>
    %26 = vector.shape_cast %25 : vector<8x32xf32> to vector<8x4x8xf32>
    %27 = tpu.transpose %26, [1, 0, 2] : vector<8x4x8xf32> -> vector<4x8x8xf32>
    %28 = vector.extract_strided_slice %18 {offsets = [0, 0], sizes = [8, 32], strides = [1, 1]} : vector<16x32xf32> to vector<8x32xf32>
    %29 = vector.shape_cast %28 : vector<8x32xf32> to vector<8x4x8xf32>
    %30 = tpu.transpose %29, [1, 0, 2] : vector<8x4x8xf32> -> vector<4x8x8xf32>
    %31 = vector.extract_strided_slice %24 {offsets = [0, 0], sizes = [8, 32], strides = [1, 1]} : vector<16x32xf32> to vector<8x32xf32>
    %32 = vector.shape_cast %31 : vector<8x32xf32> to vector<8x4x8xf32>
    %33 = tpu.transpose %32, [1, 0, 2] : vector<8x4x8xf32> -> vector<4x8x8xf32>
    %34 = arith.truncf %27 : vector<4x8x8xf32> to vector<4x8x8xbf16>
    %35 = arith.truncf %30 : vector<4x8x8xf32> to vector<4x8x8xbf16>
    "tpu.trace_start"() <{level = 10 : i32, message = "hqd,hkd->hqk"}> : () -> ()
    %cst_24 = arith.constant dense<0.000000e+00> : vector<4x8x8xf32>
    %36 = tpu.matmul %34, %35, %cst_24 {dimension_numbers = #tpu.dot_dimension_numbers<[2], [2], [1], [1], [0, 0, 0, 1, 1, 1], [0], [0]>} : vector<4x8x8xbf16>, vector<4x8x8xbf16>, vector<4x8x8xf32> -> vector<4x8x8xf32>
    "tpu.trace_stop"() : () -> ()
    %cst_25 = arith.constant 0.353553385 : f32
    %37 = vector.broadcast %cst_25 : f32 to vector<4x8x8xf32>
    %38 = arith.mulf %36, %37 : vector<4x8x8xf32>
    %39 = vector.shape_cast %0 : vector<8x8xf32> to vector<1x8x8xf32>
    %40 = vector.broadcast %39 : vector<1x8x8xf32> to vector<4x8x8xf32>
    %41 = arith.addf %38, %40 : vector<4x8x8xf32>
    %cst_26 = arith.constant dense<0xFF800000> : vector<4x8xf32>
    %42 = vector.multi_reduction <maximumf>, %41, %cst_26 [2] : vector<4x8x8xf32> to vector<4x8xf32>
    %43 = vector.shape_cast %42 : vector<4x8xf32> to vector<4x8x1xf32>
    %44 = vector.broadcast %43 : vector<4x8x1xf32> to vector<4x8x8xf32>
    %45 = arith.subf %41, %44 : vector<4x8x8xf32>
    %46 = math.exp %45 : vector<4x8x8xf32>
    %cst_27 = arith.constant dense<0.000000e+00> : vector<4x8xf32>
    %47 = vector.multi_reduction <add>, %46, %cst_27 [2] : vector<4x8x8xf32> to vector<4x8xf32>
    %48 = vector.shape_cast %47 : vector<4x8xf32> to vector<4x8x1xf32>
    %49 = tpu.reciprocal %48 {approx = true} : vector<4x8x1xf32> -> vector<4x8x1xf32>
    %50 = vector.broadcast %49 : vector<4x8x1xf32> to vector<4x8x8xf32>
    %51 = arith.mulf %46, %50 : vector<4x8x8xf32>
    %52 = arith.truncf %51 : vector<4x8x8xf32> to vector<4x8x8xbf16>
    %53 = arith.truncf %33 : vector<4x8x8xf32> to vector<4x8x8xbf16>
    "tpu.trace_start"() <{level = 10 : i32, message = "hqk,hkd->hqd"}> : () -> ()
    %cst_28 = arith.constant dense<0.000000e+00> : vector<4x8x8xf32>
    %54 = tpu.matmul %52, %53, %cst_28 {dimension_numbers = #tpu.dot_dimension_numbers<[2], [1], [1], [2], [0, 0, 0, 1, 1, 2], [0], [0]>} : vector<4x8x8xbf16>, vector<4x8x8xbf16>, vector<4x8x8xf32> -> vector<4x8x8xf32>
    "tpu.trace_stop"() : () -> ()
    %55 = tpu.transpose %54, [1, 0, 2] : vector<4x8x8xf32> -> vector<8x4x8xf32>
    %56 = vector.shape_cast %55 : vector<8x4x8xf32> to vector<8x32xf32>
    %cst_29 = arith.constant dense<0.000000e+00> : vector<8x8xf32>
    %57 = vector.multi_reduction <add>, %51, %cst_29 [0] : vector<4x8x8xf32> to vector<8x8xf32>
    %cst_30 = arith.constant 4.000000e+00 : f32
    %58 = vector.broadcast %cst_30 : f32 to vector<8x8xf32>
    %59 = arith.divf %57, %58 : vector<8x8xf32>
    %c0_31 = arith.constant 0 : index
    %c0_32 = arith.constant 0 : index
    %c0_33 = arith.constant 0 : index
    %60 = vector.load %arg22[%c0_31, %c0_32, %c0_33] : memref<2x8x8xf32, #tpu.memory_space<vmem>>, vector<1x8x8xf32>
    %61 = vector.shape_cast %60 : vector<1x8x8xf32> to vector<8x8xf32>
    %62 = vector.shape_cast %59 : vector<8x8xf32> to vector<1x8x8xf32>
    tpu.vector_store %arg22[%c0_31, %c0_32, %c0_33], %62 {strides = array<i32>} : memref<2x8x8xf32, #tpu.memory_space<vmem>>, vector<1x8x8xf32>,
    %63 = vector.extract_strided_slice %12 {offsets = [8, 0], sizes = [8, 32], strides = [1, 1]} : vector<16x32xf32> to vector<8x32xf32>
    %64 = vector.shape_cast %63 : vector<8x32xf32> to vector<8x4x8xf32>
    %65 = tpu.transpose %64, [1, 0, 2] : vector<8x4x8xf32> -> vector<4x8x8xf32>
    %66 = vector.extract_strided_slice %18 {offsets = [8, 0], sizes = [8, 32], strides = [1, 1]} : vector<16x32xf32> to vector<8x32xf32>
    %67 = vector.shape_cast %66 : vector<8x32xf32> to vector<8x4x8xf32>
    %68 = tpu.transpose %67, [1, 0, 2] : vector<8x4x8xf32> -> vector<4x8x8xf32>
    %69 = vector.extract_strided_slice %24 {offsets = [8, 0], sizes = [8, 32], strides = [1, 1]} : vector<16x32xf32> to vector<8x32xf32>
    %70 = vector.shape_cast %69 : vector<8x32xf32> to vector<8x4x8xf32>
    %71 = tpu.transpose %70, [1, 0, 2] : vector<8x4x8xf32> -> vector<4x8x8xf32>
    %72 = arith.truncf %65 : vector<4x8x8xf32> to vector<4x8x8xbf16>
    %73 = arith.truncf %68 : vector<4x8x8xf32> to vector<4x8x8xbf16>
    "tpu.trace_start"() <{level = 10 : i32, message = "hqd,hkd->hqk"}> : () -> ()
    %cst_34 = arith.constant dense<0.000000e+00> : vector<4x8x8xf32>
    %74 = tpu.matmul %72, %73, %cst_34 {dimension_numbers = #tpu.dot_dimension_numbers<[2], [2], [1], [1], [0, 0, 0, 1, 1, 1], [0], [0]>} : vector<4x8x8xbf16>, vector<4x8x8xbf16>, vector<4x8x8xf32> -> vector<4x8x8xf32>
    "tpu.trace_stop"() : () -> ()
    %cst_35 = arith.constant 0.353553385 : f32
    %75 = vector.broadcast %cst_35 : f32 to vector<4x8x8xf32>
    %76 = arith.mulf %74, %75 : vector<4x8x8xf32>
    %77 = vector.shape_cast %0 : vector<8x8xf32> to vector<1x8x8xf32>
    %78 = vector.broadcast %77 : vector<1x8x8xf32> to vector<4x8x8xf32>
    %79 = arith.addf %76, %78 : vector<4x8x8xf32>
    %cst_36 = arith.constant dense<0xFF800000> : vector<4x8xf32>
    %80 = vector.multi_reduction <maximumf>, %79, %cst_36 [2] : vector<4x8x8xf32> to vector<4x8xf32>
    %81 = vector.shape_cast %80 : vector<4x8xf32> to vector<4x8x1xf32>
    %82 = vector.broadcast %81 : vector<4x8x1xf32> to vector<4x8x8xf32>
    %83 = arith.subf %79, %82 : vector<4x8x8xf32>
    %84 = math.exp %83 : vector<4x8x8xf32>
    %cst_37 = arith.constant dense<0.000000e+00> : vector<4x8xf32>
    %85 = vector.multi_reduction <add>, %84, %cst_37 [2] : vector<4x8x8xf32> to vector<4x8xf32>
    %86 = vector.shape_cast %85 : vector<4x8xf32> to vector<4x8x1xf32>
    %87 = tpu.reciprocal %86 {approx = true} : vector<4x8x1xf32> -> vector<4x8x1xf32>
    %88 = vector.broadcast %87 : vector<4x8x1xf32> to vector<4x8x8xf32>
    %89 = arith.mulf %84, %88 : vector<4x8x8xf32>
    %90 = arith.truncf %89 : vector<4x8x8xf32> to vector<4x8x8xbf16>
    %91 = arith.truncf %71 : vector<4x8x8xf32> to vector<4x8x8xbf16>
    "tpu.trace_start"() <{level = 10 : i32, message = "hqk,hkd->hqd"}> : () -> ()
    %cst_38 = arith.constant dense<0.000000e+00> : vector<4x8x8xf32>
    %92 = tpu.matmul %90, %91, %cst_38 {dimension_numbers = #tpu.dot_dimension_numbers<[2], [1], [1], [2], [0, 0, 0, 1, 1, 2], [0], [0]>} : vector<4x8x8xbf16>, vector<4x8x8xbf16>, vector<4x8x8xf32> -> vector<4x8x8xf32>
    "tpu.trace_stop"() : () -> ()
    %93 = tpu.transpose %92, [1, 0, 2] : vector<4x8x8xf32> -> vector<8x4x8xf32>
    %94 = vector.shape_cast %93 : vector<8x4x8xf32> to vector<8x32xf32>
    %cst_39 = arith.constant dense<0.000000e+00> : vector<8x8xf32>
    %95 = vector.multi_reduction <add>, %89, %cst_39 [0] : vector<4x8x8xf32> to vector<8x8xf32>
    %cst_40 = arith.constant 4.000000e+00 : f32
    %96 = vector.broadcast %cst_40 : f32 to vector<8x8xf32>
    %97 = arith.divf %95, %96 : vector<8x8xf32>
    %c1 = arith.constant 1 : index
    %c0_41 = arith.constant 0 : index
    %c0_42 = arith.constant 0 : index
    %98 = vector.load %arg22[%c1, %c0_41, %c0_42] : memref<2x8x8xf32, #tpu.memory_space<vmem>>, vector<1x8x8xf32>
    %99 = vector.shape_cast %98 : vector<1x8x8xf32> to vector<8x8xf32>
    %100 = vector.shape_cast %97 : vector<8x8xf32> to vector<1x8x8xf32>
    tpu.vector_store %arg22[%c1, %c0_41, %c0_42], %100 {strides = array<i32>} : memref<2x8x8xf32, #tpu.memory_space<vmem>>, vector<1x8x8xf32>,
    %101 = tpu.concatenate %56, %94 in 0 : vector<8x32xf32>, vector<8x32xf32> -> vector<16x32xf32>
    %102 = arith.truncf %101 : vector<16x32xf32> to vector<16x32xbf16>
    %c0_43 = arith.constant 0 : index
    %c0_44 = arith.constant 0 : index
    %103 = vector.load %arg11[%c0_43, %c0_44] : memref<32x32xbf16, #tpu.memory_space<vmem>>, vector<32x32xbf16>
    %cst_45 = arith.constant dense<0.000000e+00> : vector<16x32xf32>
    %104 = tpu.matmul %102, %103, %cst_45 {dimension_numbers = #tpu.dot_dimension_numbers<[1], [0], [0], [1], [0, 0, 1, 1], [], []>} : vector<16x32xbf16>, vector<32x32xbf16>, vector<16x32xf32> -> vector<16x32xf32>
    %c0_46 = arith.constant 0 : index
    %c0_47 = arith.constant 0 : index
    %105 = vector.load %arg12[%c0_46, %c0_47] : memref<1x32xf32, #tpu.memory_space<vmem>>, vector<1x32xf32>
    %106 = vector.broadcast %105 : vector<1x32xf32> to vector<16x32xf32>
    %107 = arith.addf %104, %106 : vector<16x32xf32>
    %108 = arith.addf %2, %107 : vector<16x32xf32>
    %c0_48 = arith.constant 0 : index
    %c0_49 = arith.constant 0 : index
    %109 = vector.load %arg17[%c0_48, %c0_49] : memref<1x32xf32, #tpu.memory_space<vmem>>, vector<1x32xf32>
    %c0_50 = arith.constant 0 : index
    %c0_51 = arith.constant 0 : index
    %110 = vector.load %arg18[%c0_50, %c0_51] : memref<1x32xf32, #tpu.memory_space<vmem>>, vector<1x32xf32>
    %cst_52 = arith.constant dense<0.000000e+00> : vector<16xf32>
    %111 = vector.multi_reduction <add>, %108, %cst_52 [1] : vector<16x32xf32> to vector<16xf32>
    %112 = vector.shape_cast %111 : vector<16xf32> to vector<16x1xf32>
    %cst_53 = arith.constant 3.200000e+01 : f32
    %113 = vector.broadcast %cst_53 : f32 to vector<16x1xf32>
    %114 = arith.divf %112, %113 : vector<16x1xf32>
    %115 = vector.broadcast %114 : vector<16x1xf32> to vector<16x32xf32>
    %116 = arith.subf %108, %115 : vector<16x32xf32>
    %117 = arith.mulf %116, %116 : vector<16x32xf32>
    %cst_54 = arith.constant dense<0.000000e+00> : vector<16xf32>
    %118 = vector.multi_reduction <add>, %117, %cst_54 [1] : vector<16x32xf32> to vector<16xf32>
    %119 = vector.shape_cast %118 : vector<16xf32> to vector<16x1xf32>
    %cst_55 = arith.constant 3.200000e+01 : f32
    %120 = vector.broadcast %cst_55 : f32 to vector<16x1xf32>
    %121 = arith.divf %119, %120 : vector<16x1xf32>
    %122 = vector.broadcast %114 : vector<16x1xf32> to vector<16x32xf32>
    %123 = arith.subf %108, %122 : vector<16x32xf32>
    %cst_56 = arith.constant 9.99999974E-6 : f32
    %124 = vector.broadcast %cst_56 : f32 to vector<16x1xf32>
    %125 = arith.addf %121, %124 : vector<16x1xf32>
    %126 = math.rsqrt %125 : vector<16x1xf32>
    %127 = vector.broadcast %126 : vector<16x1xf32> to vector<16x32xf32>
    %128 = arith.mulf %123, %127 : vector<16x32xf32>
    %129 = vector.broadcast %109 : vector<1x32xf32> to vector<16x32xf32>
    %130 = arith.mulf %128, %129 : vector<16x32xf32>
    %131 = vector.broadcast %110 : vector<1x32xf32> to vector<16x32xf32>
    %132 = arith.addf %130, %131 : vector<16x32xf32>
    %133 = arith.truncf %132 : vector<16x32xf32> to vector<16x32xbf16>
    %c0_57 = arith.constant 0 : index
    %c0_58 = arith.constant 0 : index
    %134 = vector.load %arg13[%c0_57, %c0_58] : memref<32x64xbf16, #tpu.memory_space<vmem>>, vector<32x64xbf16>
    %cst_59 = arith.constant dense<0.000000e+00> : vector<16x64xf32>
    %135 = tpu.matmul %133, %134, %cst_59 {dimension_numbers = #tpu.dot_dimension_numbers<[1], [0], [0], [1], [0, 0, 1, 1], [], []>} : vector<16x32xbf16>, vector<32x64xbf16>, vector<16x64xf32> -> vector<16x64xf32>
    %c0_60 = arith.constant 0 : index
    %c0_61 = arith.constant 0 : index
    %136 = vector.load %arg14[%c0_60, %c0_61] : memref<1x64xf32, #tpu.memory_space<vmem>>, vector<1x64xf32>
    %137 = vector.broadcast %136 : vector<1x64xf32> to vector<16x64xf32>
    %138 = arith.addf %135, %137 : vector<16x64xf32>
    %cst_62 = arith.constant 5.000000e-01 : f32
    %139 = vector.broadcast %cst_62 : f32 to vector<16x64xf32>
    %140 = arith.mulf %139, %138 : vector<16x64xf32>
    %cst_63 = arith.constant 0.707106769 : f32
    %141 = vector.broadcast %cst_63 : f32 to vector<16x64xf32>
    %142 = arith.mulf %138, %141 : vector<16x64xf32>
    %143 = math.erf %142 : vector<16x64xf32>
    %cst_64 = arith.constant 1.000000e+00 : f32
    %144 = vector.broadcast %cst_64 : f32 to vector<16x64xf32>
    %145 = arith.addf %144, %143 : vector<16x64xf32>
    %146 = arith.mulf %140, %145 : vector<16x64xf32>
    %147 = arith.truncf %146 : vector<16x64xf32> to vector<16x64xbf16>
    %c0_65 = arith.constant 0 : index
    %c0_66 = arith.constant 0 : index
    %148 = vector.load %arg15[%c0_65, %c0_66] : memref<64x32xbf16, #tpu.memory_space<vmem>>, vector<64x32xbf16>
    %cst_67 = arith.constant dense<0.000000e+00> : vector<16x32xf32>
    %149 = tpu.matmul %147, %148, %cst_67 {dimension_numbers = #tpu.dot_dimension_numbers<[1], [0], [0], [1], [0, 0, 1, 1], [], []>} : vector<16x64xbf16>, vector<64x32xbf16>, vector<16x32xf32> -> vector<16x32xf32>
    %c0_68 = arith.constant 0 : index
    %c0_69 = arith.constant 0 : index
    %150 = vector.load %arg16[%c0_68, %c0_69] : memref<1x32xf32, #tpu.memory_space<vmem>>, vector<1x32xf32>
    %151 = vector.broadcast %150 : vector<1x32xf32> to vector<16x32xf32>
    %152 = arith.addf %149, %151 : vector<16x32xf32>
    %153 = arith.addf %132, %152 : vector<16x32xf32>
    %c0_70 = arith.constant 0 : index
    %c0_71 = arith.constant 0 : index
    %154 = vector.load %arg19[%c0_70, %c0_71] : memref<1x32xf32, #tpu.memory_space<vmem>>, vector<1x32xf32>
    %c0_72 = arith.constant 0 : index
    %c0_73 = arith.constant 0 : index
    %155 = vector.load %arg20[%c0_72, %c0_73] : memref<1x32xf32, #tpu.memory_space<vmem>>, vector<1x32xf32>
    %cst_74 = arith.constant dense<0.000000e+00> : vector<16xf32>
    %156 = vector.multi_reduction <add>, %153, %cst_74 [1] : vector<16x32xf32> to vector<16xf32>
    %157 = vector.shape_cast %156 : vector<16xf32> to vector<16x1xf32>
    %cst_75 = arith.constant 3.200000e+01 : f32
    %158 = vector.broadcast %cst_75 : f32 to vector<16x1xf32>
    %159 = arith.divf %157, %158 : vector<16x1xf32>
    %160 = vector.broadcast %159 : vector<16x1xf32> to vector<16x32xf32>
    %161 = arith.subf %153, %160 : vector<16x32xf32>
    %162 = arith.mulf %161, %161 : vector<16x32xf32>
    %cst_76 = arith.constant dense<0.000000e+00> : vector<16xf32>
    %163 = vector.multi_reduction <add>, %162, %cst_76 [1] : vector<16x32xf32> to vector<16xf32>
    %164 = vector.shape_cast %163 : vector<16xf32> to vector<16x1xf32>
    %cst_77 = arith.constant 3.200000e+01 : f32
    %165 = vector.broadcast %cst_77 : f32 to vector<16x1xf32>
    %166 = arith.divf %164, %165 : vector<16x1xf32>
    %167 = vector.broadcast %159 : vector<16x1xf32> to vector<16x32xf32>
    %168 = arith.subf %153, %167 : vector<16x32xf32>
    %cst_78 = arith.constant 9.99999974E-6 : f32
    %169 = vector.broadcast %cst_78 : f32 to vector<16x1xf32>
    %170 = arith.addf %166, %169 : vector<16x1xf32>
    %171 = math.rsqrt %170 : vector<16x1xf32>
    %172 = vector.broadcast %171 : vector<16x1xf32> to vector<16x32xf32>
    %173 = arith.mulf %168, %172 : vector<16x32xf32>
    %174 = vector.broadcast %154 : vector<1x32xf32> to vector<16x32xf32>
    %175 = arith.mulf %173, %174 : vector<16x32xf32>
    %176 = vector.broadcast %155 : vector<1x32xf32> to vector<16x32xf32>
    %177 = arith.addf %175, %176 : vector<16x32xf32>
    %178 = vector.shape_cast %177 : vector<16x32xf32> to vector<2x8x32xf32>
    %c0_79 = arith.constant 0 : index
    %c0_80 = arith.constant 0 : index
    %c0_81 = arith.constant 0 : index
    %179 = vector.load %arg21[%c0_79, %c0_80, %c0_81] : memref<2x8x32xf32, #tpu.memory_space<vmem>>, vector<2x8x32xf32>
    tpu.vector_store %arg21[%c0_79, %c0_80, %c0_81], %178 {strides = array<i32>} : memref<2x8x32xf32, #tpu.memory_space<vmem>>, vector<2x8x32xf32>,
    return
  }
  func.func @transform_0(%arg0: i32) -> (i32, i32, i32) {
    %c0_i32 = arith.constant 0 : i32
    %c0_i32_0 = arith.constant 0 : i32
    %c0_i32_1 = arith.constant 0 : i32
    return %arg0, %c0_i32, %c0_i32_0 : i32, i32, i32
  }
  func.func @transform_1(%arg0: i32) -> (i32, i32, i32) {
    %c0_i32 = arith.constant 0 : i32
    %c0_i32_0 = arith.constant 0 : i32
    %c0_i32_1 = arith.constant 0 : i32
    return %arg0, %c0_i32, %c0_i32_0 : i32, i32, i32
  }
  func.func @transform_2(%arg0: i32) -> (i32, i32, i32) {
    %c0_i32 = arith.constant 0 : i32
    %c0_i32_0 = arith.constant 0 : i32
    %c0_i32_1 = arith.constant 0 : i32
    return %arg0, %c0_i32, %c0_i32_0 : i32, i32, i32
  }
  func.func @transform_3(%arg0: i32) -> (i32, i32) {
    %c0_i32 = arith.constant 0 : i32
    %c0_i32_0 = arith.constant 0 : i32
    %c0_i32_1 = arith.constant 0 : i32
    return %c0_i32, %c0_i32_0 : i32, i32
  }
  func.func @transform_4(%arg0: i32) -> (i32, i32) {
    %c0_i32 = arith.constant 0 : i32
    %c0_i32_0 = arith.constant 0 : i32
    %c0_i32_1 = arith.constant 0 : i32
    return %c0_i32, %c0_i32_0 : i32, i32
  }
  func.func @transform_5(%arg0: i32) -> (i32, i32) {
    %c0_i32 = arith.constant 0 : i32
    %c0_i32_0 = arith.constant 0 : i32
    %c0_i32_1 = arith.constant 0 : i32
    return %c0_i32, %c0_i32_0 : i32, i32
  }
  func.func @transform_6(%arg0: i32) -> (i32, i32) {
    %c0_i32 = arith.constant 0 : i32
    %c0_i32_0 = arith.constant 0 : i32
    %c0_i32_1 = arith.constant 0 : i32
    return %c0_i32, %c0_i32_0 : i32, i32
  }
  func.func @transform_7(%arg0: i32) -> (i32, i32) {
    %c0_i32 = arith.constant 0 : i32
    %c0_i32_0 = arith.constant 0 : i32
    %c0_i32_1 = arith.constant 0 : i32
    return %c0_i32, %c0_i32_0 : i32, i32
  }
  func.func @transform_8(%arg0: i32) -> (i32, i32) {
    %c0_i32 = arith.constant 0 : i32
    %c0_i32_0 = arith.constant 0 : i32
    %c0_i32_1 = arith.constant 0 : i32
    return %c0_i32, %c0_i32_0 : i32, i32
  }
  func.func @transform_9(%arg0: i32) -> (i32, i32) {
    %c0_i32 = arith.constant 0 : i32
    %c0_i32_0 = arith.constant 0 : i32
    %c0_i32_1 = arith.constant 0 : i32
    return %c0_i32, %c0_i32_0 : i32, i32
  }
  func.func @transform_10(%arg0: i32) -> (i32, i32) {
    %c0_i32 = arith.constant 0 : i32
    %c0_i32_0 = arith.constant 0 : i32
    %c0_i32_1 = arith.constant 0 : i32
    return %c0_i32, %c0_i32_0 : i32, i32
  }
  func.func @transform_11(%arg0: i32) -> (i32, i32) {
    %c0_i32 = arith.constant 0 : i32
    %c0_i32_0 = arith.constant 0 : i32
    %c0_i32_1 = arith.constant 0 : i32
    return %c0_i32, %c0_i32_0 : i32, i32
  }
  func.func @transform_12(%arg0: i32) -> (i32, i32) {
    %c0_i32 = arith.constant 0 : i32
    %c0_i32_0 = arith.constant 0 : i32
    %c0_i32_1 = arith.constant 0 : i32
    return %c0_i32, %c0_i32_0 : i32, i32
  }
  func.func @transform_13(%arg0: i32) -> (i32, i32) {
    %c0_i32 = arith.constant 0 : i32
    %c0_i32_0 = arith.constant 0 : i32
    %c0_i32_1 = arith.constant 0 : i32
    return %c0_i32, %c0_i32_0 : i32, i32
  }
  func.func @transform_14(%arg0: i32) -> (i32, i32) {
    %c0_i32 = arith.constant 0 : i32
    %c0_i32_0 = arith.constant 0 : i32
    %c0_i32_1 = arith.constant 0 : i32
    return %c0_i32, %c0_i32_0 : i32, i32
  }
  func.func @transform_15(%arg0: i32) -> (i32, i32) {
    %c0_i32 = arith.constant 0 : i32
    %c0_i32_0 = arith.constant 0 : i32
    %c0_i32_1 = arith.constant 0 : i32
    return %c0_i32, %c0_i32_0 : i32, i32
  }
  func.func @transform_16(%arg0: i32) -> (i32, i32) {
    %c0_i32 = arith.constant 0 : i32
    %c0_i32_0 = arith.constant 0 : i32
    %c0_i32_1 = arith.constant 0 : i32
    return %c0_i32, %c0_i32_0 : i32, i32
  }
  func.func @transform_17(%arg0: i32) -> (i32, i32) {
    %c0_i32 = arith.constant 0 : i32
    %c0_i32_0 = arith.constant 0 : i32
    %c0_i32_1 = arith.constant 0 : i32
    return %c0_i32, %c0_i32_0 : i32, i32
  }
  func.func @transform_18(%arg0: i32) -> (i32, i32) {
    %c0_i32 = arith.constant 0 : i32
    %c0_i32_0 = arith.constant 0 : i32
    %c0_i32_1 = arith.constant 0 : i32
    return %c0_i32, %c0_i32_0 : i32, i32
  }
  func.func @transform_19(%arg0: i32) -> (i32, i32) {
    %c0_i32 = arith.constant 0 : i32
    %c0_i32_0 = arith.constant 0 : i32
    %c0_i32_1 = arith.constant 0 : i32
    return %c0_i32, %c0_i32_0 : i32, i32
  }
  func.func @transform_20(%arg0: i32) -> (i32, i32, i32) {
    %c0_i32 = arith.constant 0 : i32
    %c0_i32_0 = arith.constant 0 : i32
    %c0_i32_1 = arith.constant 0 : i32
    return %arg0, %c0_i32, %c0_i32_0 : i32, i32, i32
  }
  func.func @transform_21(%arg0: i32) -> (i32, i32, i32) {
    %c0_i32 = arith.constant 0 : i32
    %c0_i32_0 = arith.constant 0 : i32
    %c0_i32_1 = arith.constant 0 : i32
    return %arg0, %c0_i32, %c0_i32_0 : i32, i32, i32
  }
}

</mosaic_0001>

<bundles_post_ra>
// kernel: tpu_custom_call.1
= control target key start
LH: loop header
LB: loop body
LE: loop exit
PB: predicated region body
PF: predicated region fallthrough
CT: control target
= control target key end

     0   :  { %s3308_s0 = inlined_call_operand.vmem [shape: f32[2,8,32], index: 0, kind: input, shape index: {}]   ;;  %s3309_s1 = inlined_call_operand.vmem [shape: f32[2,8,32], index: 1, kind: input, shape index: {}]   ;;  %s3310_s2 = inlined_call_operand.vmem [shape: f32[2,8,32], index: 2, kind: input, shape index: {}]   ;;  %s3311_s3 = inlined_call_operand.hbm [shape: f32[8,8], index: 3, kind: input, shape index: {}]   ;;  %s3312_s4 = inlined_call_operand.hbm [shape: bf16[32,32], index: 4, kind: input, shape index: {}]   ;;  %s3313_s5 = inlined_call_operand.hbm [shape: bf16[32,32], index: 5, kind: input, shape index: {}]   ;;  %s3314_s6 = inlined_call_operand.hbm [shape: bf16[32,32], index: 6, kind: input, shape index: {}]   ;;  %s3315_s7 = inlined_call_operand.vmem [shape: f32[1,32], index: 7, kind: input, shape index: {}]   ;;  %s3316_s8 = inlined_call_operand.vmem [shape: f32[1,32], index: 8, kind: input, shape index: {}]   ;;  %s3317_s9 = inlined_call_operand.vmem [shape: f32[1,32], index: 9, kind: input, shape index: {}]   ;;  %s3318_s10 = inlined_call_operand.hbm [shape: bf16[32,32], index: 10, kind: input, shape index: {}]   ;;  %s3319_s11 = inlined_call_operand.vmem [shape: f32[1,32], index: 11, kind: input, shape index: {}]   ;;  %s3320_s12 = inlined_call_operand.hbm [shape: bf16[32,64], index: 12, kind: input, shape index: {}]   ;;  %s3321_s13 = inlined_call_operand.vmem [shape: f32[1,64], index: 13, kind: input, shape index: {}]   ;;  %s3322_s14 = inlined_call_operand.vmem [shape: bf16[64,32], index: 14, kind: input, shape index: {}]   ;;  %s3323_s15 = inlined_call_operand.vmem [shape: f32[1,32], index: 15, kind: input, shape index: {}]   ;;  %s3324_s16 = inlined_call_operand.vmem [shape: f32[1,32], index: 16, kind: input, shape index: {}]   ;;  %s3325_s17 = inlined_call_operand.vmem [shape: f32[1,32], index: 17, kind: input, shape index: {}]   ;;  %s3326_s18 = inlined_call_operand.vmem [shape: f32[1,32], index: 18, kind: input, shape index: {}]   ;;  %s3327_s19 = inlined_call_operand.vmem [shape: f32[1,32], index: 19, kind: input, shape index: {}]   ;;  %s3328_s20 = inlined_call_operand.hbm [shape: f32[2,8,32], index: 20, kind: output, shape index: {0}]   ;;  %s3329_s21 = inlined_call_operand.hbm [shape: f32[2,8,8], index: 21, kind: output, shape index: {1}]  }
   0x1   :  { %3333 = sst [smem:[#allocation22_spill]] %s3308_s0 }
   0x2   :  { %3334 = sst [smem:[#allocation23_spill]] %s3309_s1 }
   0x3   :  { %3335 = sst [smem:[#allocation24_spill]] %s3310_s2 }
   0x4   :  { %3336 = sst [smem:[#allocation25_spill]] %s3311_s3 }
   0x5   :  { %3337 = sst [smem:[#allocation26_spill]] %s3312_s4 }
   0x6   :  { %3338 = sst [smem:[#allocation27_spill]] %s3313_s5 }
   0x7   :  { %3339 = sst [smem:[#allocation28_spill]] %s3328_s20 }
   0x8   :  { %27 = vsyncpa [#allocation3], 0 }
   0x9   :  { %28 = vsyncpa [#allocation6], 0 }
   0xa   :  { %29 = vsyncpa [#allocation9], 0 }
   0xb   :  { %30 = vsyncpa [#allocation12], 0 }
   0xc   :  { %31 = vsyncpa [#allocation4], 0  ;;  %s3340_s26 = sld [smem:[#allocation26_spill]] }
  0x12   :  { %s54_s27 = sshll.u32 %s3340_s26, 4  ;;  %s55_s27 = int_to_ptr.hbm [resolvable:$true] %s54_s27 }
  0x13   :  { %32 = vsyncpa [#allocation15], 0  ;;  %s2518_s3 = smov [#allocation5]   ;;  %s80_s4 = sshll.u32 %s3314_s6, 4  ;;  %s81_s4 = int_to_ptr.hbm [resolvable:$true] %s80_s4 }
  0x14   :  { %s56_s28 = sshll.u32 %s2518_s3, 4  ;;  %s2519_s30 = smov 64   ;;  %s57_s28 = int_to_ptr.vmem [resolvable:$true] %s56_s28 }
  0x15   :  { %s2520_s5 = smov 4   ;;  %s2521_s22 = smov [#allocation8]  }
  0x16   :  { %62 = dma.hbm_to_vmem [thread:$0]  %s55_s27, 256, %s57_s28, [#allocation6], %s2519_s30, %s2519_s30, %s2520_s5  }
  0x17   :  { %s82_s23 = sshll.u32 %s2521_s22, 4  ;;  %s3341_s2 = sld [smem:[#allocation25_spill]]  ;;  %s83_s23 = int_to_ptr.vmem [resolvable:$true] %s82_s23 }
  0x18   :  { %88 = dma.hbm_to_vmem [thread:$0]  %s81_s4, 256, %s83_s23, [#allocation9], %s2519_s30, %s2519_s30, %s2520_s5  }
  0x19   :  { %s3342_s3 = sld [smem:[#allocation27_spill]]  ;;  %s2522_s0 = smov [#allocation2]  }
  0x1a   :  { %s46_s20 = sshll.u32 %s2522_s0, 4  ;;  %s2523_s27 = smov [#allocation7]   ;;  %s47_s20 = int_to_ptr.vmem [resolvable:$true] %s46_s20 }
  0x1b   :  { %s69_s28 = sshll.u32 %s2523_s27, 4  ;;  %s99_s24 = sshll.u32 %s3318_s10, 4  ;;  %s70_s28 = int_to_ptr.vmem [resolvable:$true] %s69_s28  ;;  %s100_s24 = int_to_ptr.hbm [resolvable:$true] %s99_s24 }
  0x1c   :  { %s2524_s6 = smov [#allocation10]  }
  0x1d   :  { %s44_s25 = sshll.u32 %s3341_s2, 4  ;;  %s114_s2 = sshll.u32 %s3320_s12, 4  ;;  %s45_s25 = int_to_ptr.hbm [resolvable:$true] %s44_s25  ;;  %s115_s2 = int_to_ptr.hbm [resolvable:$true] %s114_s2 }
  0x1e   :  { %49 = dma.hbm_to_vmem [thread:$0]  %s45_s25, 128, %s47_s20, [#allocation3]  }
  0x1f   :  { %s67_s29 = sshll.u32 %s3342_s3, 4  ;;  %s101_s26 = sshll.u32 %s2524_s6, 4  ;;  %s68_s29 = int_to_ptr.hbm [resolvable:$true] %s67_s29  ;;  %s102_s26 = int_to_ptr.vmem [resolvable:$true] %s101_s26 }
  0x20   :  { %75 = dma.hbm_to_vmem [thread:$0]  %s68_s29, 256, %s70_s28, [#allocation6], %s2519_s30, %s2519_s30, %s2520_s5  }
  0x21   :  { %107 = dma.hbm_to_vmem [thread:$0]  %s100_s24, 256, %s102_s26, [#allocation9], %s2519_s30, %s2519_s30, %s2520_s5  }
  0x22   :  { %s2525_s20 = smov [#allocation11]  }
  0x23   :  { %s116_s10 = sshll.u32 %s2525_s20, 4  ;;  %s117_s10 = int_to_ptr.vmem [resolvable:$true] %s116_s10 }
  0x24   :  { %122 = dma.hbm_to_vmem [thread:$0]  %s115_s2, 256, %s117_s10, [#allocation12], %s2519_s30, %s2519_s30, %s2520_s5  }
  0x25   :  { %2506 = dma.done.wait [#allocation3], 128  }
  0x26   :  { %2507 = vsyncadd [#allocation3], 4294967168 }
  0x27   :  { %2508 = dma.done.wait [#allocation6], 512  }
  0x28   :  { %2509 = vsyncadd [#allocation6], 4294966784 }
  0x29   :  { %2510 = dma.done.wait [#allocation9], 512  }
  0x2a   :  { %2511 = vsyncadd [#allocation9], 4294966784 }
  0x2b   :  { %2512 = dma.done.wait [#allocation12], 256  }
  0x2c   :  { %2513 = vsyncadd [#allocation12], 4294967040  ;;  %v2190_v0 = vld [vmem:[#allocation5 + $0x8] sm:$0xff]  ;;  %v2192_v1 = vld [vmem:[#allocation7 + $0x8] sm:$0xff]  ;;  %s3343_s3 = sld [smem:[#allocation22_spill]]  ;;  %vm190_vm0 = vcmask 261120  }
  0x2d   :  { %v2194_v2 = vld [vmem:[#allocation8 + $0x8] sm:$0xff]  ;;  %v2189_v3 = vld [vmem:[#allocation5] sm:$0xff]  ;;  %v2191_v4 = vld [vmem:[#allocation7] sm:$0xff]  ;;  %200 = vmatpush.bf16.msra.mxu0 %v2190_v0  ;;  %238 = vmatpush.bf16.msra.mxu1 %v2192_v1  ;;  %s3344_s27 = sld [smem:[#allocation23_spill]]  ;;  %s2526_s12 = smov 104   ;;  %vm295_vm1 = vcmask 1047556  }
  0x2e   :  { %v2193_v5 = vld [vmem:[#allocation8] sm:$0xff]  ;;  %276 = vmatpush.bf16.msra.mxu2 %v2194_v2  ;;  %s3345_s4 = sld [smem:[#allocation24_spill]]  ;;  %v2706_v15 = vld [vmem:[%s3315_s7] ss:$0 sm:$0xff]  ;;  %s2527_s25 = smov 120   ;;  %vm653_vm2 = vcmask 64512  }
  0x2f   :  { %v2711_v16 = vld [vmem:[%s3316_s8] ss:$0 sm:$0xff]  ;;  %s2528_s30 = smov 112   ;;  %v2529_v22 = vmov 1983009808   ;;  %vm793_vm3 = vcmask 1043456  }
  0x30   :  { %v300_v23 = vunpack.c.l.s4 %v2529_v22  ;;  %v2530_v35 = vmov 1934713408   ;;  %s2533_s5 = smov 24   ;;  %s2534_s29 = smov 8   ;;  %vm990_vm5 = vcmask 130048   ;;  %vm992_vm6 = vcmask 195584  }
  0x31   :  { %201 = vmatpush.bf16.msra.mxu0 %v2189_v3  ;;  %239 = vmatpush.bf16.msra.mxu1 %v2191_v4  ;;  %v324_v36 = vunpack.c.l.s4 %v2530_v35  ;;  %s2088_s8 = sshll.u32 %s3329_s21, 4  ;;  %s2537_s0 = smov 128   ;;  %s2089_s8 = int_to_ptr.hbm [resolvable:$true] %s2088_s8 }
  0x32   :  { %v163_v6 = vld [vmem:[%s3343_s3] sm:$0xff]  ;;  %v164_v7 = vld [vmem:[%s3343_s3 + $0x8] sm:$0xff]  ;;  %277 = vmatpush.bf16.msra.mxu2 %v2193_v5  ;;  %v2722_v31 = vunpack.c.0.s8 %v300_v23 }
  0x33   :  { %v165_v8 = vld [vmem:[%s3344_s27] sm:$0xff]  ;;  %v166_v9 = vld [vmem:[%s3344_s27 + $0x8] sm:$0xff]  ;;  %v169_v12 = vpack.c.bf16 %v164_v7, %v163_v6  ;;  %v2731_v44 = vunpack.c.0.s8 %v324_v36 }
  0x34   :  { %v167_v10 = vld [vmem:[%s3345_s4] sm:$0xff]  ;;  %v168_v11 = vld [vmem:[%s3345_s4 + $0x8] sm:$0xff]  ;;  %v208_v13 = vpack.c.bf16 %v166_v9, %v165_v8 }
  0x35   :  { %v246_v14 = vpack.c.bf16 %v168_v11, %v167_v10  ;;  %2117 = vmatmul.msk.bf16.vlgmr.msra.gmra.mxu0 %vm190_vm0, %v169_v12 }
  0x36   :  { %2126 = vmatmul.msk.bf16.vlgmr.msra.gmra.mxu1 %vm190_vm0, %v208_v13 }
  0x37   :  { %2135 = vmatmul.msk.bf16.vlgmr.msra.gmra.mxu2 %vm190_vm0, %v246_v14 }
  0xb2   :  { %v203_v17 = vpop.f32.mrf.mxu0 }
  0xb3   :  { %v241_v18 = vpop.f32.mrf.mxu1  ;;  %v204_v19 = vadd.f32 %v2706_v15, %v203_v17 }
  0xb4   :  { %v242_v20 = vadd.f32 %v2711_v16, %v241_v18 }
  0xb5   :  { %288 = vrot.lane.b32.xlu2 %v204_v19, %s2528_s30  ;;  %v297_v29 = vrot.slane %v204_v19, 4 }
  0xb6   :  { %412 = vrot.lane.b32.xlu1 %v242_v20, %s2526_s12  ;;  %406 = vrot.lane.b32.xlu0 %v242_v20, %s2527_s25  ;;  %v417_v42 = vrot.slane %v242_v20, 4 }
  0xbd   :  { %291 = vrot.lane.b32.xlu2 %v204_v19, %s2526_s12 }
  0xbe   :  { %409 = vrot.lane.b32.xlu0 %v242_v20, %s2528_s30  ;;  %285 = vrot.lane.b32.xlu1 %v204_v19, %s2527_s25 }
 0x10f   :  { %v289_v21 = vpop.permute.xlu2 %288 }
 0x110   :  { %v294_v24 = vrot.slane %v289_v21, 4  ;;  %v298_v37 = vsel %vm295_vm1, %v289_v21, %v297_v29 }
 0x111   :  { %v306_v43 = vperm.slane %v298_v37, %v2722_v31 }
 0x112   :  { %v296_v32 = vsel %vm295_vm1, %v294_v24, %v204_v19 }
 0x113   :  { %v302_v39 = vperm.slane %v296_v32, %v2722_v31  ;;  %v333_v62 = vrot.slane %v306_v43, 4 }
 0x115   :  { %v321_v54 = vrot.slane %v302_v39, 4 }
 0x117   :  { %v292_v33 = vpop.permute.xlu2 %291 }
 0x118   :  { %v307_v40 = vrot.slane %v292_v33, 4 }
 0x128   :  { %v413_v25 = vpop.permute.xlu1 %412  ;;  %v407_v26 = vpop.permute.xlu0 %406 }
 0x129   :  { %v427_v27 = vrot.slane %v413_v25, 4  ;;  %v429_v28 = vrot.slane %v407_v26, 4 }
 0x12b   :  { %v430_v30 = vsel %vm295_vm1, %v413_v25, %v429_v28  ;;  %v428_v34 = vsel %vm295_vm1, %v427_v27, %v407_v26 }
 0x12c   :  { %v438_v38 = vperm.slane %v430_v30, %v2722_v31  ;;  %v434_v41 = vperm.slane %v428_v34, %v2722_v31 }
 0x12e   :  { %v451_v51 = vrot.slane %v438_v38, 4  ;;  %v439_v55 = vrot.slane %v434_v41, 4 }
 0x130   :  { %v410_v45 = vpop.permute.xlu0 %409  ;;  %v286_v46 = vpop.permute.xlu1 %285 }
 0x131   :  { %v415_v47 = vrot.slane %v410_v45, 4  ;;  %v418_v48 = vsel %vm295_vm1, %v410_v45, %v417_v42  ;;  %v308_v49 = vsel %vm295_vm1, %v307_v40, %v286_v46  ;;  %v309_v50 = vrot.slane %v286_v46, 4 }
 0x132   :  { %v426_v52 = vperm.slane %v418_v48, %v2722_v31  ;;  %v314_v53 = vperm.slane %v308_v49, %v2722_v31 }
 0x133   :  { %v416_v56 = vsel %vm295_vm1, %v415_v47, %v242_v20  ;;  %v310_v57 = vsel %vm295_vm1, %v292_v33, %v309_v50 }
 0x134   :  { %v422_v58 = vperm.slane %v416_v56, %v2722_v31  ;;  %v452_v59 = vsel %vm295_vm1, %v451_v51, %v426_v52  ;;  %v453_v60 = vrot.slane %v426_v52, 4  ;;  %v318_v61 = vperm.slane %v310_v57, %v2722_v31 }
 0x135   :  { %v458_v63 = vperm.slane %v452_v59, %v2731_v44  ;;  %v319_v0 = vrot.slane %v314_v53, 4  ;;  %v322_v1 = vsel %vm295_vm1, %v314_v53, %v321_v54 }
 0x136   :  { %v440_v2 = vsel %vm295_vm1, %v439_v55, %v422_v58  ;;  %v441_v3 = vrot.slane %v422_v58, 4  ;;  %v454_v4 = vsel %vm295_vm1, %v438_v38, %v453_v60  ;;  %v330_v5 = vperm.slane %v322_v1, %v2731_v44 }
 0x137   :  { %v446_v6 = vperm.slane %v440_v2, %v2731_v44  ;;  %v462_v7 = vperm.slane %v454_v4, %v2731_v44  ;;  %v467_v8 = vrot.slane %v458_v63, 4  ;;  %v320_v9 = vsel %vm295_vm1, %v319_v0, %v302_v39 }
 0x138   :  { %v442_v10 = vsel %vm295_vm1, %v434_v41, %v441_v3  ;;  %v326_v11 = vperm.slane %v320_v9, %v2731_v44  ;;  %v331_v12 = vrot.slane %v318_v61, 4  ;;  %v334_v13 = vsel %vm295_vm1, %v318_v61, %v333_v62 }
 0x139   :  { %v450_v14 = vperm.slane %v442_v10, %v2731_v44  ;;  %v463_v17 = vrot.slane %v446_v6, 4  ;;  %v468_v18 = vsel %vm295_vm1, 0.0, %v467_v8  ;;  %v469_v19 = vrot.slane %v462_v7, 4 }
 0x13a   :  { %v332_v20 = vsel %vm295_vm1, %v331_v12, %v306_v43  ;;  %v342_v21 = vperm.slane %v334_v13, %v2731_v44  ;;  %v343_v22 = vrot.slane %v326_v11, 4  ;;  %v345_v23 = vrot.slane %v330_v5, 4 }
 0x13b   :  { %v465_v24 = vrot.slane %v450_v14, 4  ;;  %v470_v25 = vsel %vm295_vm1, 0.0, %v469_v19  ;;  %v482_v26 = vsel %vm295_vm1, %v469_v19, %v458_v63  ;;  %v338_v27 = vperm.slane %v332_v20, %v2731_v44 }
 0x13c   :  { %v486_v28 = vperm.slane %v482_v26, %v2722_v31  ;;  %v487_v29 = vrot.slane %v470_v25, 4  ;;  %v344_v30 = vsel %vm295_vm1, 0.0, %v343_v22  ;;  %v346_v32 = vsel %vm295_vm1, 0.0, %v345_v23 }
 0x13d   :  { %v466_v33 = vsel %vm295_vm1, 0.0, %v465_v24  ;;  %v347_v34 = vrot.slane %v338_v27, 4  ;;  %v349_v35 = vrot.slane %v342_v21, 4  ;;  %v351_v36 = vsel %vm295_vm1, %v345_v23, %v326_v11 }
 0x13e   :  { %v476_v37 = vrot.slane %v466_v33, 4  ;;  %v488_v38 = vsel %vm295_vm1, %v487_v29, %v468_v18  ;;  %v355_v39 = vperm.slane %v351_v36, %v2722_v31  ;;  %v356_v40 = vrot.slane %v346_v32, 4 }
 0x13f   :  { %v348_v41 = vsel %vm295_vm1, 0.0, %v347_v34  ;;  %v350_v42 = vsel %vm295_vm1, 0.0, %v349_v35  ;;  %v362_v43 = vsel %vm295_vm1, %v349_v35, %v338_v27  ;;  %v464_v45 = vsel %vm295_vm1, 0.0, %v463_v17 }
 0x140   :  { %v357_v46 = vsel %vm295_vm1, %v356_v40, %v344_v30  ;;  %v366_v47 = vperm.slane %v362_v43, %v2722_v31  ;;  %v367_v48 = vrot.slane %v350_v42, 4  ;;  %v375_v49 = vrot.slane %v355_v39, 4 }
 0x141   :  { %v361_v50 = vperm.slane %v357_v46, %v2722_v31  ;;  %v471_v51 = vsel %vm295_vm1, %v465_v24, %v446_v6  ;;  %v477_v52 = vsel %vm295_vm1, %v476_v37, %v464_v45  ;;  %v492_v53 = vperm.slane %v488_v38, %v2722_v31 }
 0x142   :  { %v368_v54 = vsel %vm295_vm1, %v367_v48, %v348_v41  ;;  %v475_v55 = vperm.slane %v471_v51, %v2722_v31  ;;  %v481_v56 = vperm.slane %v477_v52, %v2722_v31  ;;  %v507_v57 = vrot.slane %v486_v28, 4  ;;  %v205_v51 = vpop.f32.mrf.mxu0 }
 0x143   :  { %v505_v58 = vrot.slane %v492_v53, 4  ;;  %v372_v59 = vperm.slane %v368_v54, %v2722_v31  ;;  %v387_v60 = vrot.slane %v366_v47, 4  ;;  %v376_v0 = vsel %vm295_vm1, %v361_v50, %v375_v49  ;;  %v279_v49 = vpop.f32.mrf.mxu2  ;;  %v2815_v54 = vld [vmem:[#allocation2] sm:$0xff] }
 0x144   :  { %v495_v61 = vrot.slane %v475_v55, 4  ;;  %v508_v62 = vsel %vm295_vm1, %v492_v53, %v507_v57  ;;  %v493_v63 = vrot.slane %v481_v56, 4  ;;  %v373_v4 = vrot.slane %v361_v50, 4  ;;  %v243_v50 = vpop.f32.mrf.mxu1 }
 0x145   :  { %v516_v1 = vperm.slane %v508_v62, %v2731_v44  ;;  %v506_v2 = vsel %vm295_vm1, %v505_v58, %v486_v28  ;;  %v388_v3 = vsel %vm295_vm1, %v372_v59, %v387_v60  ;;  %v384_v14 = vperm.slane %v376_v0, %v2731_v44 }
 0x146   :  { %v496_v5 = vsel %vm295_vm1, %v481_v56, %v495_v61  ;;  %v494_v6 = vsel %vm295_vm1, %v493_v63, %v475_v55  ;;  %v512_v7 = vperm.slane %v506_v2, %v2731_v44  ;;  %v396_v8 = vperm.slane %v388_v3, %v2731_v44 }
 0x147   :  { %v504_v9 = vperm.slane %v496_v5, %v2731_v44  ;;  %v521_v10 = vrot.slane %v516_v1, 4  ;;  %v500_v11 = vperm.slane %v494_v6, %v2731_v44  ;;  %v374_v12 = vsel %vm295_vm1, %v373_v4, %v355_v39 }
 0x148   :  { %v517_v13 = vrot.slane %v512_v7, 4  ;;  %v385_v17 = vrot.slane %v372_v59, 4  ;;  %v380_v21 = vperm.slane %v374_v12, %v2731_v44  ;;  %v401_v28 = vrot.slane %v396_v8, 4 }
 0x149   :  { %v522_v18 = vsel %vm295_vm1, %v521_v10, %v504_v9  ;;  %v523_v19 = vrot.slane %v504_v9, 4  ;;  %v519_v20 = vrot.slane %v500_v11, 4  ;;  %v403_v36 = vrot.slane %v384_v14, 4  ;;  %v2256_v10 = vld [vmem:[%s3317_s9] ss:$0 sm:$0xff]  ;;  %s2532_s9 = smov 16  }
 0x14a   :  { %v651_v22 = vpack.c.bf16 %v522_v18, %v522_v18  ;;  %v518_v23 = vsel %vm295_vm1, %v517_v13, %v500_v11  ;;  %v386_v24 = vsel %vm295_vm1, %v385_v17, %v366_v47  ;;  %v399_v35 = vrot.slane %v380_v21, 4 }
 0x14b   :  { %v649_v25 = vpack.c.bf16 %v518_v23, %v518_v23  ;;  %v524_v26 = vsel %vm295_vm1, %v516_v1, %v523_v19  ;;  %v520_v27 = vsel %vm295_vm1, %v512_v7, %v519_v20  ;;  %v392_v33 = vperm.slane %v386_v24, %v2731_v44  ;;  %v2813_v52 = vpop.f32.mrf.mxu2 }
 0x14c   :  { %v696_v29 = vsel %vm653_vm2, %v651_v22, 0  ;;  %v652_v30 = vpack.c.bf16 %v524_v26, %v524_v26  ;;  %v650_v32 = vpack.c.bf16 %v520_v27, %v520_v27  ;;  %v402_v40 = vsel %vm295_vm1, %v401_v28, %v384_v14 }
 0x14d   :  { %705 = vmatpush.bf16.xpose.msrb.mxu1 %v696_v29  ;;  %v658_v34 = vsel %vm653_vm2, %v649_v25, 0  ;;  %v397_v39 = vrot.slane %v392_v33, 4  ;;  %v404_v42 = vsel %vm295_vm1, %v396_v8, %v403_v36  ;;  %v400_v43 = vsel %vm295_vm1, %v392_v33, %v399_v35 }
 0x14e   :  { %667 = vmatpush.bf16.xpose.msra.mxu3 %v658_v34  ;;  %v715_v37 = vsel %vm653_vm2, %v652_v30, 0  ;;  %v677_v38 = vsel %vm653_vm2, %v650_v32, 0  ;;  %v647_v45 = vpack.c.bf16 %v402_v40, %v402_v40  ;;  %v648_v47 = vpack.c.bf16 %v404_v42, %v404_v42 }
 0x14f   :  { %724 = vmatpush.bf16.xpose.msrb.mxu2 %v715_v37  ;;  %686 = vmatpush.bf16.xpose.msrb.mxu0 %v677_v38  ;;  %v398_v41 = vsel %vm295_vm1, %v397_v39, %v380_v21  ;;  %v646_v48 = vpack.c.bf16 %v400_v43, %v400_v43  ;;  %v2829_v11 = vadd.f32 %v2711_v16, %v243_v50 }
 0x150   :  { %v645_v46 = vpack.c.bf16 %v398_v41, %v398_v41  ;;  %v2831_v12 = vadd.f32 %v2256_v10, %v279_v49  ;;  %v2839_v14 = vadd.f32 %v2706_v15, %v205_v51 }
 0x152   :  { %v2224_v13 = vpack.i.bf16 %v2829_v11, %v2831_v12  ;;  %v537_v51 = vrot.slane %v2831_v12, 4 }
 0x154   :  { %2138 = vmatmul.msk.bf16.vlgmr.msrb.gmra.mxu1 %vm653_vm2, %v647_v45 }
 0x155   :  { %2136 = vmatmul.msk.bf16.vlgmr.msra.gmra.mxu3 %vm653_vm2, %v645_v46 }
 0x156   :  { %2139 = vmatmul.msk.bf16.vlgmr.msrb.gmra.mxu2 %vm653_vm2, %v648_v47  ;;  %2137 = vmatmul.msk.bf16.vlgmr.msrb.gmra.mxu0 %vm653_vm2, %v646_v48  ;;  %v1142_v48 = vrot.slane %v2829_v11, 4 }
 0x1d1   :  { %v707_v53 = vpop.f32.mrf.mxu1 }
 0x1d2   :  { %v732_v55 = vmul.f32 0.35355338, %v707_v53 }
 0x1d3   :  { %v688_v56 = vpop.f32.mrf.mxu0 }
 0x1d4   :  { %v736_v57 = vadd.f32 %v732_v55, %v2815_v54  ;;  %v731_v58 = vmul.f32 0.35355338, %v688_v56  ;;  %v2869_v56 = vadd.f32 %v2256_v10, %v2813_v52 }
 0x1d6   :  { %v744_v59 = vsel %vm653_vm2, %v736_v57, -inf  ;;  %v735_v1 = vadd.f32 %v731_v58, %v2815_v54 }
 0x1d7   :  { %745 = vmax.xlane.f32.xlu2 %v744_v59 }
 0x1d8   :  { %v669_v60 = vpop.f32.mrf.mxu3  ;;  %v741_v7 = vsel %vm653_vm2, %v735_v1, -inf }
 0x1d9   :  { %v730_v61 = vmul.f32 0.35355338, %v669_v60  ;;  %v709_v62 = vpop.f32.mrf.mxu1  ;;  %v726_v63 = vpop.f32.mrf.mxu2 }
 0x1da   :  { %v733_v0 = vmul.f32 0.35355338, %v726_v63 }
 0x1db   :  { %v690_v2 = vpop.f32.mrf.mxu0  ;;  %v734_v3 = vadd.f32 %v730_v61, %v2815_v54 }
 0x1dc   :  { %v737_v4 = vadd.f32 %v733_v0, %v2815_v54 }
 0x1dd   :  { %v738_v5 = vsel %vm653_vm2, %v734_v3, -inf }
 0x1de   :  { %v747_v6 = vsel %vm653_vm2, %v737_v4, -inf  ;;  %739 = vmax.xlane.f32.xlu0 %v738_v5 }
 0x1df   :  { %748 = vmax.xlane.f32.xlu1 %v747_v6  ;;  %742 = vmax.xlane.f32.xlu2 %v741_v7 }
 0x1e0   :  { %v671_v8 = vpop.f32.mrf.mxu3 }
 0x1e1   :  { %v728_v9 = vpop.f32.mrf.mxu2 }
 0x1f2   :  { %2225 = vrot.lane.b32.xlu0 %v2224_v13, %s2527_s25 }
 0x1f7   :  { %2235 = vrot.lane.b32.xlu2 %v2224_v13, %s2526_s12 }
 0x1f8   :  { %2230 = vrot.lane.b32.xlu1 %v2224_v13, %s2528_s30 }
 0x1ff   :  { %1011 = vrot.lane.b32.xlu2 %v2839_v14, %s2527_s25 }
 0x207   :  { %1014 = vrot.lane.b32.xlu2 %v2839_v14, %s2528_s30 }
 0x20f   :  { %1017 = vrot.lane.b32.xlu2 %v2839_v14, %s2526_s12 }
 0x24a   :  { %v746_v16 = vpop.xlane.xlu2 %745 }
 0x24b   :  { %v752_v17 = vsub.f32 %v736_v57, %v746_v16 }
 0x24d   :  { %v758_v18 = vmul.f32 1.442695, %v752_v17 }
 0x24f   :  { %2264 = vpow2.f32 %v758_v18 }
 0x251   :  { %v740_v19 = vpop.xlane.xlu0 %739 }
 0x252   :  { %v749_v20 = vpop.xlane.xlu1 %748  ;;  %v743_v21 = vpop.xlane.xlu2 %742  ;;  %v750_v22 = vsub.f32 %v734_v3, %v740_v19 }
 0x253   :  { %v753_v23 = vsub.f32 %v737_v4, %v749_v20  ;;  %v751_v15 = vsub.f32 %v735_v1, %v743_v21 }
 0x254   :  { %v754_v24 = vmul.f32 1.442695, %v750_v22 }
 0x255   :  { %v2847_v25 = vpop.eup %2264  ;;  %v760_v26 = vmul.f32 1.442695, %v753_v23  ;;  %v756_v28 = vmul.f32 1.442695, %v751_v15 }
 0x256   :  { %2266 = vpow2.f32 %v754_v24  ;;  %v768_v27 = vsel %vm653_vm2, %v2847_v25, 0.0 }
 0x257   :  { %2268 = vpow2.f32 %v760_v26  ;;  %769 = vadd.xlane.f32.xlu2 %v768_v27 }
 0x258   :  { %2270 = vpow2.f32 %v756_v28 }
 0x25a   :  { %v2236_v34 = vpop.permute.xlu2 %2235 }
 0x25b   :  { %v2237_v36 = vunpack.i.l.bf16 %v2236_v34  ;;  %v2238_v43 = vunpack.i.h.bf16 %v2236_v34 }
 0x25c   :  { %v2851_v29 = vpop.eup %2266 }
 0x25d   :  { %v2853_v30 = vpop.eup %2268  ;;  %v762_v32 = vsel %vm653_vm2, %v2851_v29, 0.0  ;;  %v547_v40 = vrot.slane %v2237_v36, 4  ;;  %v1152_v57 = vrot.slane %v2238_v43, 4 }
 0x25e   :  { %v771_v33 = vsel %vm653_vm2, %v2853_v30, 0.0  ;;  %763 = vadd.xlane.f32.xlu0 %v762_v32  ;;  %v2859_v35 = vpop.eup %2270 }
 0x25f   :  { %772 = vadd.xlane.f32.xlu1 %v771_v33  ;;  %v765_v39 = vsel %vm653_vm2, %v2859_v35, 0.0 }
 0x264   :  { %v2226_v37 = vpop.permute.xlu0 %2225 }
 0x265   :  { %v2227_v38 = vunpack.i.l.bf16 %v2226_v37  ;;  %v2228_v41 = vunpack.i.h.bf16 %v2226_v37 }
 0x266   :  { %766 = vadd.xlane.f32.xlu0 %v765_v39 }
 0x267   :  { %v549_v42 = vrot.slane %v2227_v38, 4  ;;  %v548_v45 = vsel %vm295_vm1, %v547_v40, %v2227_v38  ;;  %v1154_v50 = vrot.slane %v2228_v41, 4  ;;  %v1153_v0 = vsel %vm295_vm1, %v1152_v57, %v2228_v41 }
 0x268   :  { %v554_v58 = vperm.slane %v548_v45, %v2722_v31  ;;  %v1159_v9 = vperm.slane %v1153_v0, %v2722_v31 }
 0x269   :  { %v550_v46 = vsel %vm295_vm1, %v2237_v36, %v549_v42  ;;  %v1155_v3 = vsel %vm295_vm1, %v2238_v43, %v1154_v50 }
 0x26a   :  { %v558_v47 = vperm.slane %v550_v46, %v2722_v31  ;;  %v2231_v49 = vpop.permute.xlu1 %2230  ;;  %v559_v5 = vrot.slane %v554_v58, 4  ;;  %v1164_v24 = vrot.slane %v1159_v9, 4 }
 0x26b   :  { %v2233_v53 = vunpack.i.h.bf16 %v2231_v49  ;;  %v2232_v55 = vunpack.i.l.bf16 %v2231_v49 }
 0x26c   :  { %v571_v59 = vrot.slane %v558_v47, 4 }
 0x26d   :  { %v1140_v60 = vrot.slane %v2233_v53, 4  ;;  %v1143_v61 = vsel %vm295_vm1, %v2233_v53, %v1142_v48  ;;  %v535_v62 = vrot.slane %v2232_v55, 4  ;;  %v538_v63 = vsel %vm295_vm1, %v2232_v55, %v537_v51 }
 0x26e   :  { %v1151_v1 = vperm.slane %v1143_v61, %v2722_v31  ;;  %v546_v2 = vperm.slane %v538_v63, %v2722_v31 }
 0x26f   :  { %v1141_v52 = vsel %vm295_vm1, %v1140_v60, %v2829_v11  ;;  %v536_v4 = vsel %vm295_vm1, %v535_v62, %v2831_v12  ;;  %1257 = vrot.lane.b32.xlu2 %v2869_v56, %s2526_s12  ;;  %v1163_v12 = vperm.slane %v1155_v3, %v2722_v31 }
 0x270   :  { %v1147_v6 = vperm.slane %v1141_v52, %v2722_v31  ;;  %v542_v7 = vperm.slane %v536_v4, %v2722_v31  ;;  %v572_v8 = vsel %vm295_vm1, %v571_v59, %v546_v2  ;;  %v573_v10 = vrot.slane %v546_v2, 4 }
 0x271   :  { %v1178_v16 = vrot.slane %v1151_v1, 4  ;;  %v578_v19 = vperm.slane %v572_v8, %v2731_v44  ;;  %v1176_v32 = vrot.slane %v1163_v12, 4 }
 0x272   :  { %v1166_v13 = vrot.slane %v1147_v6, 4  ;;  %v560_v11 = vsel %vm295_vm1, %v559_v5, %v542_v7  ;;  %v561_v17 = vrot.slane %v542_v7, 4  ;;  %v574_v18 = vsel %vm295_vm1, %v558_v47, %v573_v10 }
 0x273   :  { %v566_v21 = vperm.slane %v560_v11, %v2731_v44  ;;  %v582_v22 = vperm.slane %v574_v18, %v2731_v44  ;;  %v1179_v28 = vsel %vm295_vm1, %v1163_v12, %v1178_v16  ;;  %v587_v34 = vrot.slane %v578_v19, 4 }
 0x274   :  { %v562_v20 = vsel %vm295_vm1, %v554_v58, %v561_v17  ;;  %v1167_v23 = vsel %vm295_vm1, %v1159_v9, %v1166_v13  ;;  %v1165_v38 = vsel %vm295_vm1, %v1164_v24, %v1147_v6  ;;  %v1187_v42 = vperm.slane %v1179_v28, %v2731_v44 }
 0x275   :  { %v570_v15 = vperm.slane %v562_v20, %v2731_v44  ;;  %v589_v26 = vrot.slane %v582_v22, 4  ;;  %v1175_v27 = vperm.slane %v1167_v23, %v2731_v44  ;;  %v583_v36 = vrot.slane %v566_v21, 4 }
 0x276   :  { %v588_v46 = vsel %vm295_vm1, 0.0, %v587_v34  ;;  %v1177_v47 = vsel %vm295_vm1, %v1176_v32, %v1151_v1  ;;  %v1171_v51 = vperm.slane %v1165_v38, %v2731_v44  ;;  %v1194_v55 = vrot.slane %v1187_v42, 4 }
 0x277   :  { %v585_v33 = vrot.slane %v570_v15, 4  ;;  %v590_v37 = vsel %vm295_vm1, 0.0, %v589_v26  ;;  %v602_v40 = vsel %vm295_vm1, %v589_v26, %v578_v19  ;;  %v1190_v45 = vrot.slane %v1175_v27, 4 }
 0x278   :  { %v607_v41 = vrot.slane %v590_v37, 4  ;;  %v584_v49 = vsel %vm295_vm1, 0.0, %v583_v36  ;;  %v606_v50 = vperm.slane %v602_v40, %v2722_v31  ;;  %v1183_v60 = vperm.slane %v1177_v47, %v2731_v44 }
 0x279   :  { %v586_v39 = vsel %vm295_vm1, 0.0, %v585_v33  ;;  %v591_v48 = vsel %vm295_vm1, %v585_v33, %v566_v21  ;;  %v1191_v59 = vsel %vm295_vm1, 0.0, %v1190_v45  ;;  %v1188_v63 = vrot.slane %v1171_v51, 4 }
 0x27a   :  { %v596_v43 = vrot.slane %v586_v39, 4  ;;  %v608_v53 = vsel %vm295_vm1, %v607_v41, %v588_v46  ;;  %v595_v57 = vperm.slane %v591_v48, %v2722_v31  ;;  %v627_v1 = vrot.slane %v606_v50, 4 }
 0x27b   :  { %v612_v62 = vperm.slane %v608_v53, %v2722_v31  ;;  %v1195_v2 = vsel %vm295_vm1, 0.0, %v1194_v55  ;;  %v1201_v3 = vrot.slane %v1191_v59, 4  ;;  %v1207_v52 = vsel %vm295_vm1, %v1194_v55, %v1183_v60 }
 0x27c   :  { %v597_v58 = vsel %vm295_vm1, %v596_v43, %v584_v49  ;;  %v615_v0 = vrot.slane %v595_v57, 4  ;;  %v1192_v4 = vrot.slane %v1183_v60, 4  ;;  %v1189_v7 = vsel %vm295_vm1, 0.0, %v1188_v63 }
 0x27d   :  { %v601_v61 = vperm.slane %v597_v58, %v2722_v31  ;;  %v628_v6 = vsel %vm295_vm1, %v612_v62, %v627_v1  ;;  %v1212_v8 = vrot.slane %v1195_v2, 4  ;;  %v1211_v9 = vperm.slane %v1207_v52, %v2722_v31 }
 0x27e   :  { %v1196_v10 = vsel %vm295_vm1, %v1190_v45, %v1171_v51  ;;  %v1202_v13 = vsel %vm295_vm1, %v1201_v3, %v1189_v7  ;;  %v636_v11 = vperm.slane %v628_v6, %v2731_v44  ;;  %v1193_v17 = vsel %vm295_vm1, 0.0, %v1192_v4 }
 0x27f   :  { %v616_v5 = vsel %vm295_vm1, %v601_v61, %v615_v0  ;;  %v1200_v18 = vperm.slane %v1196_v10, %v2722_v31  ;;  %v1206_v19 = vperm.slane %v1202_v13, %v2722_v31  ;;  %v1213_v20 = vsel %vm295_vm1, %v1212_v8, %v1193_v17  ;;  %v1012_v17 = vpop.permute.xlu2 %1011 }
 0x280   :  { %v624_v16 = vperm.slane %v616_v5, %v2731_v44  ;;  %v641_v12 = vrot.slane %v636_v11, 4  ;;  %v1217_v21 = vperm.slane %v1213_v20, %v2722_v31  ;;  %v1232_v22 = vrot.slane %v1211_v9, 4 }
 0x281   :  { %v613_v23 = vrot.slane %v601_v61, 4  ;;  %v1220_v24 = vrot.slane %v1200_v18, 4  ;;  %v625_v26 = vrot.slane %v612_v62, 4  ;;  %v1218_v47 = vrot.slane %v1206_v19, 4 }
 0x282   :  { %v642_v15 = vsel %vm295_vm1, %v641_v12, %v624_v16  ;;  %v643_v27 = vrot.slane %v624_v16, 4  ;;  %v1233_v32 = vsel %vm295_vm1, %v1217_v21, %v1232_v22  ;;  %v1230_v49 = vrot.slane %v1217_v21, 4 }
 0x283   :  { %v788_v28 = vpack.c.bf16 %v642_v15, %v642_v15  ;;  %v614_v33 = vsel %vm295_vm1, %v613_v23, %v595_v57  ;;  %v1221_v34 = vsel %vm295_vm1, %v1206_v19, %v1220_v24  ;;  %v1241_v36 = vperm.slane %v1233_v32, %v2731_v44 }
 0x284   :  { %v620_v37 = vperm.slane %v614_v33, %v2731_v44  ;;  %v626_v38 = vsel %vm295_vm1, %v625_v26, %v606_v50  ;;  %v1229_v40 = vperm.slane %v1221_v34, %v2731_v44  ;;  %v644_v42 = vsel %vm295_vm1, %v636_v11, %v643_v27 }
 0x285   :  { %v833_v39 = vsel %vm793_vm3, %v788_v28, 0  ;;  %v632_v41 = vperm.slane %v626_v38, %v2731_v44  ;;  %v1246_v43 = vrot.slane %v1241_v36, 4  ;;  %v789_v46 = vpack.c.bf16 %v644_v42, %v644_v42 }
 0x286   :  { %842 = vmatpush.bf16.msra.mxu1 %v833_v39  ;;  %v639_v45 = vrot.slane %v620_v37, 4  ;;  %v1248_v51 = vrot.slane %v1229_v40, 4  ;;  %v1219_v55 = vsel %vm295_vm1, %v1218_v47, %v1200_v18  ;;  %v1231_v61 = vsel %vm295_vm1, %v1230_v49, %v1211_v9 }
 0x287   :  { %v637_v48 = vrot.slane %v632_v41, 4  ;;  %v1247_v53 = vsel %vm295_vm1, %v1246_v43, %v1229_v40  ;;  %v852_v50 = vsel %vm793_vm3, %v789_v46, 0  ;;  %v1225_v60 = vperm.slane %v1219_v55, %v2731_v44  ;;  %v1015_v12 = vpop.permute.xlu2 %1014 }
 0x288   :  { %v640_v57 = vsel %vm295_vm1, %v632_v41, %v639_v45  ;;  %v1376_v58 = vpack.c.bf16 %v1247_v53, %v1247_v53  ;;  %861 = vmatpush.bf16.msra.mxu2 %v852_v50  ;;  %v1237_v63 = vperm.slane %v1231_v61, %v2731_v44  ;;  %v1249_v0 = vsel %vm295_vm1, %v1241_v36, %v1248_v51 }
 0x289   :  { %v638_v59 = vsel %vm295_vm1, %v637_v48, %v620_v37  ;;  %v787_v1 = vpack.c.bf16 %v640_v57, %v640_v57  ;;  %v1377_v3 = vpack.c.bf16 %v1249_v0, %v1249_v0  ;;  %v1244_v52 = vrot.slane %v1225_v60, 4 }
 0x28a   :  { %v786_v62 = vpack.c.bf16 %v638_v59, %v638_v59  ;;  %v1420_v2 = vsel %vm653_vm2, %v1376_v58, 0  ;;  %v1242_v5 = vrot.slane %v1237_v63, 4  ;;  %v1022_v18 = vrot.slane %v2839_v14, 4 }
 0x28b   :  { %1429 = vmatpush.bf16.xpose.msrb.mxu1 %v1420_v2  ;;  %v814_v6 = vsel %vm793_vm3, %v787_v1, 0  ;;  %v1439_v7 = vsel %vm653_vm2, %v1377_v3, 0  ;;  %v1245_v8 = vsel %vm295_vm1, %v1237_v63, %v1244_v52  ;;  %v1034_v20 = vrot.slane %v1012_v17, 4 }
 0x28c   :  { %v795_v4 = vsel %vm793_vm3, %v786_v62, 0  ;;  %823 = vmatpush.bf16.msra.mxu0 %v814_v6  ;;  %v1243_v9 = vsel %vm295_vm1, %v1242_v5, %v1225_v60  ;;  %1448 = vmatpush.bf16.xpose.msrb.mxu2 %v1439_v7  ;;  %v1375_v10 = vpack.c.bf16 %v1245_v8, %v1245_v8  ;;  %v1020_v21 = vrot.slane %v1015_v12, 4 }
 0x28d   :  { %804 = vmatpush.bf16.msrb.mxu3 %v795_v4  ;;  %v1374_v13 = vpack.c.bf16 %v1243_v9, %v1243_v9  ;;  %v1023_v22 = vsel %vm295_vm1, %v1015_v12, %v1022_v18  ;;  %v2531_v62 = vmov 4.0  }
 0x28e   :  { %v1401_v16 = vsel %vm653_vm2, %v1375_v10, 0  ;;  %v1031_v24 = vperm.slane %v1023_v22, %v2722_v31  ;;  %v1021_v26 = vsel %vm295_vm1, %v1020_v21, %v2839_v14 }
 0x28f   :  { %v1382_v11 = vsel %vm653_vm2, %v1374_v13, 0  ;;  %v1018_v19 = vpop.permute.xlu2 %1017  ;;  %v1027_v32 = vperm.slane %v1021_v26, %v2722_v31 }
 0x290   :  { %1410 = vmatpush.bf16.xpose.msrb.mxu0 %v1401_v16  ;;  %v1032_v23 = vrot.slane %v1018_v19, 4  ;;  %v1035_v15 = vsel %vm295_vm1, %v1018_v19, %v1034_v20  ;;  %v1058_v33 = vrot.slane %v1031_v24, 4 }
 0x291   :  { %1391 = vmatpush.bf16.xpose.msra.mxu3 %v1382_v11  ;;  %v1043_v27 = vperm.slane %v1035_v15, %v2722_v31  ;;  %v1046_v38 = vrot.slane %v1027_v32, 4 }
 0x292   :  { %v1033_v28 = vsel %vm295_vm1, %v1032_v23, %v1012_v17 }
 0x293   :  { %v1039_v34 = vperm.slane %v1033_v28, %v2722_v31  ;;  %v1056_v36 = vrot.slane %v1043_v27, 4  ;;  %v1059_v37 = vsel %vm295_vm1, %v1043_v27, %v1058_v33 }
 0x294   :  { %v1067_v39 = vperm.slane %v1059_v37, %v2731_v44 }
 0x295   :  { %v1044_v40 = vrot.slane %v1039_v34, 4  ;;  %v1047_v41 = vsel %vm295_vm1, %v1039_v34, %v1046_v38  ;;  %v1057_v14 = vsel %vm295_vm1, %v1056_v36, %v1031_v24 }
 0x296   :  { %v1055_v42 = vperm.slane %v1047_v41, %v2731_v44  ;;  %v1063_v43 = vperm.slane %v1057_v14, %v2731_v44  ;;  %v1074_v45 = vrot.slane %v1067_v39, 4 }
 0x297   :  { %v1045_v46 = vsel %vm295_vm1, %v1044_v40, %v1027_v32 }
 0x298   :  { %v1051_v47 = vperm.slane %v1045_v46, %v2731_v44  ;;  %v1070_v48 = vrot.slane %v1055_v42, 4  ;;  %v1072_v49 = vrot.slane %v1063_v43, 4  ;;  %v1075_v51 = vsel %vm295_vm1, 0.0, %v1074_v45 }
 0x299   :  { %v1087_v50 = vsel %vm295_vm1, %v1074_v45, %v1063_v43  ;;  %v1092_v55 = vrot.slane %v1075_v51, 4 }
 0x29a   :  { %v1068_v57 = vrot.slane %v1051_v47, 4  ;;  %v1071_v58 = vsel %vm295_vm1, 0.0, %v1070_v48  ;;  %v1073_v59 = vsel %vm295_vm1, 0.0, %v1072_v49  ;;  %v1076_v60 = vsel %vm295_vm1, %v1070_v48, %v1051_v47 }
 0x29b   :  { %v1091_v61 = vperm.slane %v1087_v50, %v2722_v31  ;;  %v1081_v63 = vrot.slane %v1071_v58, 4  ;;  %v1093_v0 = vsel %vm295_vm1, %v1092_v55, %v1073_v59  ;;  %v1080_v3 = vperm.slane %v1076_v60, %v2722_v31 }
 0x29c   :  { %v1069_v1 = vsel %vm295_vm1, 0.0, %v1068_v57  ;;  %v1097_v4 = vperm.slane %v1093_v0, %v2722_v31 }
 0x29d   :  { %v1112_v5 = vrot.slane %v1091_v61, 4  ;;  %v1082_v8 = vsel %vm295_vm1, %v1081_v63, %v1069_v1  ;;  %v1100_v16 = vrot.slane %v1080_v3, 4 }
 0x29e   :  { %v1086_v13 = vperm.slane %v1082_v8, %v2722_v31  ;;  %v1110_v19 = vrot.slane %v1097_v4, 4 }
 0x29f   :  { %v1113_v11 = vsel %vm295_vm1, %v1097_v4, %v1112_v5 }
 0x2a0   :  { %v1121_v21 = vperm.slane %v1113_v11, %v2731_v44  ;;  %v1101_v23 = vsel %vm295_vm1, %v1086_v13, %v1100_v16  ;;  %v1098_v24 = vrot.slane %v1086_v13, 4  ;;  %v1111_v28 = vsel %vm295_vm1, %v1110_v19, %v1091_v61 }
 0x2a1   :  { %v1109_v32 = vperm.slane %v1101_v23, %v2731_v44  ;;  %v1117_v36 = vperm.slane %v1111_v28, %v2731_v44 }
 0x2a2   :  { %v1126_v33 = vrot.slane %v1121_v21, 4 }
 0x2a3   :  { %v1122_v46 = vrot.slane %v1117_v36, 4  ;;  %v1128_v48 = vrot.slane %v1109_v32, 4 }
 0x2a4   :  { %v1127_v38 = vsel %vm295_vm1, %v1126_v33, %v1109_v32 }
 0x2a5   :  { %v1372_v45 = vpack.c.bf16 %v1127_v38, %v1127_v38  ;;  %v1129_v55 = vsel %vm295_vm1, %v1121_v21, %v1128_v48 }
 0x2a6   :  { %v1373_v59 = vpack.c.bf16 %v1129_v55, %v1129_v55 }
 0x2ca   :  { %v770_v53 = vpop.xlane.xlu2 %769 }
 0x2cb   :  { %2272 = vrcp.f32 %v770_v53 }
 0x2cc   :  { %2274 = vrcp.f32 %v2531_v62 }
 0x2d1   :  { %v2273_v2 = vpop.eup %2272  ;;  %v764_v52 = vpop.xlane.xlu0 %763 }
 0x2d2   :  { %v780_v6 = vmul.f32 %v2273_v2, %v2847_v25  ;;  %v773_v7 = vpop.xlane.xlu1 %772  ;;  %2276 = vrcp.f32 %v764_v52  ;;  %v2275_v9 = vpop.eup %2274 }
 0x2d3   :  { %2278 = vrcp.f32 %v773_v7  ;;  %v1002_v17 = vmul.f32 4.0, %v2275_v9  ;;  %vm1006_vm4 = vweird.f32 %v2275_v9 }
 0x2d4   :  { %v784_v10 = vpack.c.bf16 %v780_v6, %v780_v6  ;;  %v997_v47 = vsel %vm653_vm2, %v780_v6, 0.0 }
 0x2d5   :  { %v1003_v26 = vsub.f32 1.0, %v1002_v17 }
 0x2d6   :  { %2142 = vmatmul.msk.bf16.vlgmr.msra.gmra.mxu1 %vm653_vm2, %v784_v10 }
 0x2d7   :  { %v1004_v34 = vmul.f32 %v2275_v9, %v1003_v26 }
 0x2d8   :  { %v2277_v12 = vpop.eup %2276 }
 0x2d9   :  { %v2279_v18 = vpop.eup %2278  ;;  %v778_v25 = vmul.f32 %v2277_v12, %v2851_v29  ;;  %v767_v20 = vpop.xlane.xlu0 %766  ;;  %v1099_v29 = vsel %vm295_vm1, %v1098_v24, %v1080_v3  ;;  %v1005_v42 = vadd.f32 %v2275_v9, %v1004_v34 }
 0x2da   :  { %v781_v22 = vmul.f32 %v2279_v18, %v2853_v30  ;;  %2280 = vrcp.f32 %v767_v20  ;;  %v1105_v39 = vperm.slane %v1099_v29, %v2731_v44 }
 0x2db   :  { %v782_v15 = vpack.c.bf16 %v778_v25, %v778_v25  ;;  %v994_v40 = vsel %vm653_vm2, %v778_v25, 0.0  ;;  %v3012_v51 = vsel %vm1006_vm4, %v2275_v9, %v1005_v42 }
 0x2dc   :  { %v785_v27 = vpack.c.bf16 %v781_v22, %v781_v22  ;;  %v999_v49 = vsel %vm653_vm2, %v781_v22, 0.0  ;;  %v1123_v50 = vsel %vm295_vm1, %v1122_v46, %v1105_v39  ;;  %v1124_v60 = vrot.slane %v1105_v39, 4 }
 0x2dd   :  { %2140 = vmatmul.msk.bf16.vlgmr.msrb.gmra.mxu3 %vm653_vm2, %v782_v15  ;;  %v1370_v58 = vpack.c.bf16 %v1123_v50, %v1123_v50 }
 0x2de   :  { %2143 = vmatmul.msk.bf16.vlgmr.msra.gmra.mxu2 %vm653_vm2, %v785_v27  ;;  %v1125_v61 = vsel %vm295_vm1, %v1117_v36, %v1124_v60 }
 0x2df   :  { %v1371_v62 = vpack.c.bf16 %v1125_v61, %v1125_v61 }
 0x2e0   :  { %v2281_v30 = vpop.eup %2280 }
 0x2e1   :  { %v779_v37 = vmul.f32 %v2281_v30, %v2859_v35 }
 0x2e3   :  { %v783_v41 = vpack.c.bf16 %v779_v37, %v779_v37  ;;  %v995_v14 = vsel %vm653_vm2, %v779_v37, 0.0 }
 0x2e4   :  { %v996_v43 = vadd.f32 %v995_v14, %v994_v40 }
 0x2e5   :  { %2141 = vmatmul.msk.bf16.vlgmr.msra.gmra.mxu0 %vm653_vm2, %v783_v41 }
 0x2e6   :  { %v998_v35 = vadd.f32 %v997_v47, %v996_v43  ;;  %2146 = vmatmul.msk.bf16.vlgmr.msrb.gmra.mxu1 %vm653_vm2, %v1372_v45 }
 0x2e8   :  { %v1000_v53 = vadd.f32 %v999_v49, %v998_v35 }
 0x2ea   :  { %v1008_v57 = vmul.f32 %v3012_v51, %v1000_v53 }
 0x2ec   :  { %1009 = vst.msk [vmem:[#allocation14] sm:$0xff] %vm653_vm2, %v1008_v57 }
 0x2ed   :  { %2144 = vmatmul.msk.bf16.vlgmr.msra.gmra.mxu3 %vm653_vm2, %v1370_v58 }
 0x2ee   :  { %2147 = vmatmul.msk.bf16.vlgmr.msrb.gmra.mxu2 %vm653_vm2, %v1373_v59 }
 0x2f5   :  { %2145 = vmatmul.msk.bf16.vlgmr.msrb.gmra.mxu0 %vm653_vm2, %v1371_v62 }
 0x353   :  { %v844_v63 = vpop.f32.mrf.mxu1 }
 0x354   :  { %v867_v1 = vrot.slane %v844_v63, 4 }
 0x35b   :  { %v846_v0 = vpop.f32.mrf.mxu1 }
 0x360   :  { %v806_v2 = vpop.f32.mrf.mxu3 }
 0x361   :  { %v868_v3 = vsel %vm295_vm1, %v867_v1, %v806_v2  ;;  %v869_v52 = vrot.slane %v806_v2, 4  ;;  %v863_v4 = vpop.f32.mrf.mxu2 }
 0x362   :  { %v874_v5 = vperm.slane %v868_v3, %v2722_v31  ;;  %v879_v6 = vrot.slane %v863_v4, 4  ;;  %v825_v7 = vpop.f32.mrf.mxu0 }
 0x363   :  { %v870_v8 = vsel %vm295_vm1, %v844_v63, %v869_v52  ;;  %v881_v9 = vrot.slane %v825_v7, 4  ;;  %v1431_v10 = vpop.f32.mrf.mxu1 }
 0x364   :  { %v878_v13 = vperm.slane %v870_v8, %v2722_v31  ;;  %v893_v16 = vrot.slane %v874_v5, 4  ;;  %v880_v11 = vsel %vm295_vm1, %v879_v6, %v825_v7  ;;  %v1456_v17 = vmul.f32 0.35355338, %v1431_v10 }
 0x365   :  { %v882_v12 = vsel %vm295_vm1, %v863_v4, %v881_v9  ;;  %v886_v18 = vperm.slane %v880_v11, %v2722_v31 }
 0x366   :  { %v905_v19 = vrot.slane %v878_v13, 4  ;;  %v890_v25 = vperm.slane %v882_v12, %v2722_v31  ;;  %v3031_v20 = vadd.f32 %v1456_v17, %v2815_v54 }
 0x367   :  { %v891_v21 = vrot.slane %v886_v18, 4  ;;  %v894_v22 = vsel %vm295_vm1, %v886_v18, %v893_v16 }
 0x368   :  { %v902_v23 = vperm.slane %v894_v22, %v2731_v44  ;;  %v903_v15 = vrot.slane %v890_v25, 4  ;;  %v906_v24 = vsel %vm295_vm1, %v890_v25, %v905_v19  ;;  %v1468_v26 = vsel %vm653_vm2, %v3031_v20, -inf  ;;  %v808_v27 = vpop.f32.mrf.mxu3 }
 0x369   :  { %v892_v28 = vsel %vm295_vm1, %v891_v21, %v874_v5  ;;  %v914_v32 = vperm.slane %v906_v24, %v2731_v44  ;;  %v865_v33 = vpop.f32.mrf.mxu2  ;;  %1469 = vmax.xlane.f32.xlu1 %v1468_v26 }
 0x36a   :  { %v898_v29 = vperm.slane %v892_v28, %v2731_v44  ;;  %v904_v34 = vsel %vm295_vm1, %v903_v15, %v878_v13  ;;  %v917_v30 = vrot.slane %v902_v23, 4  ;;  %v827_v36 = vpop.f32.mrf.mxu0 }
 0x36b   :  { %v910_v37 = vperm.slane %v904_v34, %v2731_v44  ;;  %v921_v38 = vrot.slane %v914_v32, 4  ;;  %v1433_v39 = vpop.f32.mrf.mxu1 }
 0x36c   :  { %v915_v40 = vrot.slane %v898_v29, 4  ;;  %v918_v41 = vsel %vm295_vm1, 0.0, %v917_v30  ;;  %v923_v14 = vsel %vm295_vm1, %v917_v30, %v898_v29 }
 0x36d   :  { %v919_v42 = vrot.slane %v910_v37, 4  ;;  %v922_v43 = vsel %vm295_vm1, 0.0, %v921_v38  ;;  %v927_v45 = vperm.slane %v923_v14, %v2722_v31  ;;  %v928_v46 = vrot.slane %v918_v41, 4 }
 0x36e   :  { %v916_v47 = vsel %vm295_vm1, 0.0, %v915_v40  ;;  %v934_v48 = vsel %vm295_vm1, %v921_v38, %v910_v37  ;;  %v939_v35 = vrot.slane %v922_v43, 4 }
 0x36f   :  { %v920_v49 = vsel %vm295_vm1, 0.0, %v919_v42  ;;  %v929_v53 = vsel %vm295_vm1, %v928_v46, %v916_v47  ;;  %v938_v50 = vperm.slane %v934_v48, %v2722_v31  ;;  %v947_v55 = vrot.slane %v927_v45, 4 }
 0x370   :  { %v1393_v57 = vpop.f32.mrf.mxu3  ;;  %v933_v58 = vperm.slane %v929_v53, %v2722_v31  ;;  %v940_v59 = vsel %vm295_vm1, %v939_v35, %v920_v49  ;;  %v1258_v49 = vpop.permute.xlu2 %1257 }
 0x371   :  { %v1454_v60 = vmul.f32 0.35355338, %v1393_v57  ;;  %v1450_v61 = vpop.f32.mrf.mxu2  ;;  %v944_v62 = vperm.slane %v940_v59, %v2722_v31  ;;  %v959_v63 = vrot.slane %v938_v50, 4 }
 0x372   :  { %v1412_v0 = vpop.f32.mrf.mxu0  ;;  %v948_v1 = vsel %vm295_vm1, %v933_v58, %v947_v55  ;;  %v945_v2 = vrot.slane %v933_v58, 4  ;;  %v1457_v11 = vmul.f32 0.35355338, %v1450_v61  ;;  %v1262_v61 = vrot.slane %v2869_v56, 4 }
 0x373   :  { %v1455_v3 = vmul.f32 0.35355338, %v1412_v0  ;;  %v1458_v52 = vadd.f32 %v1454_v60, %v2815_v54  ;;  %v956_v4 = vperm.slane %v948_v1, %v2731_v44  ;;  %v960_v5 = vsel %vm295_vm1, %v944_v62, %v959_v63 }
 0x374   :  { %v968_v6 = vperm.slane %v960_v5, %v2731_v44  ;;  %v946_v7 = vsel %vm295_vm1, %v945_v2, %v927_v45  ;;  %v957_v8 = vrot.slane %v944_v62, 4  ;;  %v1461_v28 = vadd.f32 %v1457_v11, %v2815_v54 }
 0x375   :  { %v1462_v9 = vsel %vm653_vm2, %v1458_v52, -inf  ;;  %v1459_v10 = vadd.f32 %v1455_v3, %v2815_v54  ;;  %v975_v13 = vrot.slane %v956_v4, 4  ;;  %v952_v16 = vperm.slane %v946_v7, %v2731_v44 }
 0x376   :  { %1463 = vmax.xlane.f32.xlu1 %v1462_v9  ;;  %v973_v17 = vrot.slane %v968_v6, 4  ;;  %v958_v12 = vsel %vm295_vm1, %v957_v8, %v938_v50  ;;  %v1471_v33 = vsel %vm653_vm2, %v1461_v28, -inf  ;;  %v1272_v50 = vrot.slane %v1258_v49, 4 }
 0x377   :  { %v1465_v18 = vsel %vm653_vm2, %v1459_v10, -inf  ;;  %v3067_v19 = vsel %vm295_vm1, %v968_v6, %v975_v13  ;;  %v964_v25 = vperm.slane %v958_v12, %v2731_v44  ;;  %v971_v21 = vrot.slane %v952_v16, 4 }
 0x378   :  { %1466 = vmax.xlane.f32.xlu0 %v1465_v18  ;;  %v1395_v22 = vpop.f32.mrf.mxu3  ;;  %v3071_v23 = vsel %vm295_vm1, %v973_v17, %v956_v4 }
 0x379   :  { %v1452_v15 = vpop.f32.mrf.mxu2  ;;  %v969_v24 = vrot.slane %v964_v25, 4  ;;  %v3074_v26 = vsel %vm295_vm1, %v964_v25, %v971_v21 }
 0x37a   :  { %v1414_v27 = vpop.f32.mrf.mxu0 }
 0x37b   :  { %v3078_v32 = vsel %vm295_vm1, %v969_v24, %v952_v16 }
 0x380   :  { %1472 = vmax.xlane.f32.xlu0 %v1471_v33 }
 0x38f   :  { %1251 = vrot.lane.b32.xlu1 %v2869_v56, %s2527_s25 }
 0x394   :  { %1254 = vrot.lane.b32.xlu0 %v2869_v56, %s2528_s30 }
 0x3dc   :  { %v1470_v29 = vpop.xlane.xlu1 %1469 }
 0x3dd   :  { %v1476_v34 = vsub.f32 %v3031_v20, %v1470_v29 }
 0x3df   :  { %v1482_v30 = vmul.f32 1.442695, %v1476_v34 }
 0x3e1   :  { %2282 = vpow2.f32 %v1482_v30 }
 0x3e7   :  { %v3086_v36 = vpop.eup %2282 }
 0x3e8   :  { %v1492_v54 = vsel %vm653_vm2, %v3086_v36, 0.0 }
 0x3e9   :  { %1493 = vadd.xlane.f32.xlu2 %v1492_v54  ;;  %v1464_v37 = vpop.xlane.xlu1 %1463 }
 0x3ea   :  { %v1474_v38 = vsub.f32 %v1458_v52, %v1464_v37 }
 0x3eb   :  { %v1467_v39 = vpop.xlane.xlu0 %1466 }
 0x3ec   :  { %v1478_v40 = vmul.f32 1.442695, %v1474_v38  ;;  %v1475_v41 = vsub.f32 %v1459_v10, %v1467_v39 }
 0x3ee   :  { %2284 = vpow2.f32 %v1478_v40  ;;  %v1480_v14 = vmul.f32 1.442695, %v1475_v41 }
 0x3f0   :  { %2286 = vpow2.f32 %v1480_v14 }
 0x3f3   :  { %v1473_v42 = vpop.xlane.xlu0 %1472 }
 0x3f4   :  { %v3090_v43 = vpop.eup %2284  ;;  %v1477_v20 = vsub.f32 %v1461_v28, %v1473_v42 }
 0x3f5   :  { %v1486_v45 = vsel %vm653_vm2, %v3090_v43, 0.0 }
 0x3f6   :  { %v1484_v46 = vmul.f32 1.442695, %v1477_v20  ;;  %1487 = vadd.xlane.f32.xlu0 %v1486_v45  ;;  %v3094_v47 = vpop.eup %2286 }
 0x3f7   :  { %v1489_v48 = vsel %vm653_vm2, %v3094_v47, 0.0 }
 0x3f8   :  { %2288 = vpow2.f32 %v1484_v46 }
 0x3fe   :  { %v3098_v35 = vpop.eup %2288  ;;  %1490 = vadd.xlane.f32.xlu0 %v1489_v48 }
 0x3ff   :  { %v1495_v53 = vsel %vm653_vm2, %v3098_v35, 0.0 }
 0x400   :  { %1496 = vadd.xlane.f32.xlu1 %v1495_v53 }
 0x401   :  { %v1252_v55 = vpop.permute.xlu1 %1251 }
 0x402   :  { %v1274_v57 = vrot.slane %v1252_v55, 4  ;;  %v1273_v58 = vsel %vm295_vm1, %v1272_v50, %v1252_v55 }
 0x403   :  { %v1279_v62 = vperm.slane %v1273_v58, %v2722_v31 }
 0x404   :  { %v1275_v59 = vsel %vm295_vm1, %v1258_v49, %v1274_v57 }
 0x405   :  { %v1283_v60 = vperm.slane %v1275_v59, %v2722_v31  ;;  %v1284_v4 = vrot.slane %v1279_v62, 4 }
 0x406   :  { %v1255_v63 = vpop.permute.xlu0 %1254 }
 0x407   :  { %v1296_v0 = vrot.slane %v1283_v60, 4  ;;  %v1260_v1 = vrot.slane %v1255_v63, 4  ;;  %v1263_v2 = vsel %vm295_vm1, %v1255_v63, %v1262_v61 }
 0x408   :  { %v1271_v3 = vperm.slane %v1263_v2, %v2722_v31 }
 0x409   :  { %v1261_v52 = vsel %vm295_vm1, %v1260_v1, %v2869_v56 }
 0x40a   :  { %v1267_v5 = vperm.slane %v1261_v52, %v2722_v31  ;;  %v1297_v6 = vsel %vm295_vm1, %v1296_v0, %v1271_v3  ;;  %v1298_v7 = vrot.slane %v1271_v3, 4 }
 0x40b   :  { %v1303_v8 = vperm.slane %v1297_v6, %v2731_v44 }
 0x40c   :  { %v1285_v9 = vsel %vm295_vm1, %v1284_v4, %v1267_v5  ;;  %v1286_v10 = vrot.slane %v1267_v5, 4  ;;  %v1299_v13 = vsel %vm295_vm1, %v1283_v60, %v1298_v7 }
 0x40d   :  { %v1291_v16 = vperm.slane %v1285_v9, %v2731_v44  ;;  %v1307_v11 = vperm.slane %v1299_v13, %v2731_v44  ;;  %v1312_v12 = vrot.slane %v1303_v8, 4 }
 0x40e   :  { %v1287_v17 = vsel %vm295_vm1, %v1279_v62, %v1286_v10 }
 0x40f   :  { %v1295_v56 = vperm.slane %v1287_v17, %v2731_v44  ;;  %v1314_v18 = vrot.slane %v1307_v11, 4  ;;  %v1308_v25 = vrot.slane %v1291_v16, 4  ;;  %v1313_v33 = vsel %vm295_vm1, 0.0, %v1312_v12 }
 0x411   :  { %v1310_v21 = vrot.slane %v1295_v56, 4  ;;  %v1315_v22 = vsel %vm295_vm1, 0.0, %v1314_v18  ;;  %v1327_v15 = vsel %vm295_vm1, %v1314_v18, %v1303_v8  ;;  %v1309_v38 = vsel %vm295_vm1, 0.0, %v1308_v25 }
 0x412   :  { %v1331_v24 = vperm.slane %v1327_v15, %v2722_v31  ;;  %v1332_v27 = vrot.slane %v1315_v22, 4 }
 0x413   :  { %v1311_v28 = vsel %vm295_vm1, 0.0, %v1310_v21  ;;  %v1316_v29 = vsel %vm295_vm1, %v1310_v21, %v1291_v16 }
 0x414   :  { %v1321_v34 = vrot.slane %v1311_v28, 4  ;;  %v1333_v30 = vsel %vm295_vm1, %v1332_v27, %v1313_v33  ;;  %v1352_v54 = vrot.slane %v1331_v24, 4  ;;  %v1320_v37 = vperm.slane %v1316_v29, %v2722_v31 }
 0x415   :  { %v1337_v39 = vperm.slane %v1333_v30, %v2722_v31 }
 0x416   :  { %v1322_v40 = vsel %vm295_vm1, %v1321_v34, %v1309_v38  ;;  %v1340_v41 = vrot.slane %v1320_v37, 4 }
 0x417   :  { %v1350_v14 = vrot.slane %v1337_v39, 4  ;;  %v1326_v42 = vperm.slane %v1322_v40, %v2722_v31  ;;  %v1353_v20 = vsel %vm295_vm1, %v1337_v39, %v1352_v54 }
 0x418   :  { %v1361_v45 = vperm.slane %v1353_v20, %v2731_v44 }
 0x419   :  { %v1341_v46 = vsel %vm295_vm1, %v1326_v42, %v1340_v41  ;;  %v1338_v48 = vrot.slane %v1326_v42, 4  ;;  %v1351_v49 = vsel %vm295_vm1, %v1350_v14, %v1331_v24 }
 0x41a   :  { %v1349_v53 = vperm.slane %v1341_v46, %v2731_v44  ;;  %v1366_v50 = vrot.slane %v1361_v45, 4  ;;  %v1357_v55 = vperm.slane %v1351_v49, %v2731_v44 }
 0x41b   :  { %v1339_v57 = vsel %vm295_vm1, %v1338_v48, %v1320_v37 }
 0x41c   :  { %v1367_v58 = vsel %vm295_vm1, %v1366_v50, %v1349_v53  ;;  %v1345_v59 = vperm.slane %v1339_v57, %v2731_v44  ;;  %v1362_v60 = vrot.slane %v1357_v55, 4  ;;  %v1368_v61 = vrot.slane %v1349_v53, 4 }
 0x41d   :  { %v1512_v62 = vpack.c.bf16 %v1367_v58, %v1367_v58 }
 0x41e   :  { %v1363_v63 = vsel %vm295_vm1, %v1362_v60, %v1345_v59  ;;  %v1369_v0 = vsel %vm295_vm1, %v1361_v45, %v1368_v61  ;;  %v1364_v1 = vrot.slane %v1345_v59, 4 }
 0x41f   :  { %v1556_v2 = vsel %vm793_vm3, %v1512_v62, 0  ;;  %v1510_v3 = vpack.c.bf16 %v1363_v63, %v1363_v63  ;;  %v1513_v52 = vpack.c.bf16 %v1369_v0, %v1369_v0 }
 0x420   :  { %1565 = vmatpush.bf16.msra.mxu1 %v1556_v2  ;;  %v1365_v4 = vsel %vm295_vm1, %v1357_v55, %v1364_v1 }
 0x421   :  { %v1518_v5 = vsel %vm793_vm3, %v1510_v3, 0  ;;  %v1575_v6 = vsel %vm793_vm3, %v1513_v52, 0  ;;  %v1511_v7 = vpack.c.bf16 %v1365_v4, %v1365_v4 }
 0x422   :  { %1527 = vmatpush.bf16.msrb.mxu3 %v1518_v5  ;;  %1584 = vmatpush.bf16.msra.mxu2 %v1575_v6 }
 0x423   :  { %v1537_v8 = vsel %vm793_vm3, %v1511_v7, 0 }
 0x424   :  { %1546 = vmatpush.bf16.msra.mxu0 %v1537_v8 }
 0x45c   :  { %v1494_v9 = vpop.xlane.xlu2 %1493 }
 0x45d   :  { %2290 = vrcp.f32 %v1494_v9 }
 0x463   :  { %v2291_v10 = vpop.eup %2290 }
 0x464   :  { %v1504_v13 = vmul.f32 %v2291_v10, %v3086_v36 }
 0x466   :  { %v1508_v16 = vpack.c.bf16 %v1504_v13, %v1504_v13 }
 0x468   :  { %2150 = vmatmul.msk.bf16.vlgmr.msra.gmra.mxu1 %vm653_vm2, %v1508_v16 }
 0x469   :  { %v1488_v11 = vpop.xlane.xlu0 %1487 }
 0x46a   :  { %2292 = vrcp.f32 %v1488_v11 }
 0x470   :  { %v2293_v17 = vpop.eup %2292 }
 0x471   :  { %v1502_v56 = vmul.f32 %v2293_v17, %v3090_v43  ;;  %v1491_v12 = vpop.xlane.xlu0 %1490  ;;  %v1718_v43 = vsel %vm653_vm2, %v1504_v13, 0.0 }
 0x472   :  { %2294 = vrcp.f32 %v1491_v12 }
 0x473   :  { %v1506_v18 = vpack.c.bf16 %v1502_v56, %v1502_v56  ;;  %v1497_v25 = vpop.xlane.xlu1 %1496  ;;  %v1715_v36 = vsel %vm653_vm2, %v1502_v56, 0.0 }
 0x474   :  { %2296 = vrcp.f32 %v1497_v25 }
 0x475   :  { %2148 = vmatmul.msk.bf16.vlgmr.msrb.gmra.mxu3 %vm653_vm2, %v1506_v18 }
 0x478   :  { %v2295_v21 = vpop.eup %2294 }
 0x479   :  { %v1503_v22 = vmul.f32 %v2295_v21, %v3094_v47 }
 0x47a   :  { %v2297_v15 = vpop.eup %2296 }
 0x47b   :  { %v1507_v24 = vpack.c.bf16 %v1503_v22, %v1503_v22  ;;  %v1716_v27 = vsel %vm653_vm2, %v1503_v22, 0.0  ;;  %v1505_v28 = vmul.f32 %v2297_v15, %v3098_v35 }
 0x47c   :  { %v1717_v33 = vadd.f32 %v1716_v27, %v1715_v36 }
 0x47d   :  { %v1509_v29 = vpack.c.bf16 %v1505_v28, %v1505_v28  ;;  %2149 = vmatmul.msk.bf16.vlgmr.msra.gmra.mxu0 %vm653_vm2, %v1507_v24  ;;  %v1720_v30 = vsel %vm653_vm2, %v1505_v28, 0.0 }
 0x47e   :  { %v1719_v34 = vadd.f32 %v1718_v43, %v1717_v33 }
 0x47f   :  { %2151 = vmatmul.msk.bf16.vlgmr.msra.gmra.mxu2 %vm653_vm2, %v1509_v29 }
 0x480   :  { %v1721_v47 = vadd.f32 %v1720_v30, %v1719_v34 }
 0x482   :  { %v1722_v54 = vmul.f32 %v1721_v47, %v3012_v51 }
 0x484   :  { %1724 = vst.msk [vmem:[#allocation14 + $0x8] sm:$0xff] %vm653_vm2, %v1722_v54 }
 0x4e5   :  { %v1567_v37 = vpop.f32.mrf.mxu1 }
 0x4e6   :  { %v1590_v41 = vrot.slane %v1567_v37, 4 }
 0x4ed   :  { %v1569_v38 = vpop.f32.mrf.mxu1 }
 0x4f8   :  { %v1529_v39 = vpop.f32.mrf.mxu3 }
 0x4f9   :  { %v1592_v35 = vrot.slane %v1529_v39, 4  ;;  %v1591_v42 = vsel %vm295_vm1, %v1590_v41, %v1529_v39 }
 0x4fa   :  { %v1548_v40 = vpop.f32.mrf.mxu0  ;;  %v1597_v48 = vperm.slane %v1591_v42, %v2722_v31 }
 0x4fb   :  { %v1593_v14 = vsel %vm295_vm1, %v1567_v37, %v1592_v35  ;;  %v1604_v46 = vrot.slane %v1548_v40, 4 }
 0x4fc   :  { %v1601_v20 = vperm.slane %v1593_v14, %v2722_v31  ;;  %v1616_v59 = vrot.slane %v1597_v48, 4 }
 0x4fe   :  { %v1628_v55 = vrot.slane %v1601_v20, 4 }
 0x500   :  { %v1531_v45 = vpop.f32.mrf.mxu3 }
 0x502   :  { %v1550_v49 = vpop.f32.mrf.mxu0  ;;  %v1586_v51 = vpop.f32.mrf.mxu2 }
 0x503   :  { %v1602_v53 = vrot.slane %v1586_v51, 4  ;;  %v1605_v50 = vsel %vm295_vm1, %v1586_v51, %v1604_v46  ;;  %v2196_v51 = vld [vmem:[#allocation10 + $0x8] sm:$0xff] }
 0x504   :  { %v1613_v57 = vperm.slane %v1605_v50, %v2722_v31  ;;  %1755 = vmatpush.bf16.msra.mxu3 %v2196_v51 }
 0x505   :  { %v1603_v58 = vsel %vm295_vm1, %v1602_v53, %v1548_v40 }
 0x506   :  { %v1609_v60 = vperm.slane %v1603_v58, %v2722_v31  ;;  %v1626_v61 = vrot.slane %v1613_v57, 4  ;;  %v1629_v62 = vsel %vm295_vm1, %v1613_v57, %v1628_v55 }
 0x507   :  { %v1637_v63 = vperm.slane %v1629_v62, %v2731_v44 }
 0x508   :  { %v1614_v0 = vrot.slane %v1609_v60, 4  ;;  %v1617_v1 = vsel %vm295_vm1, %v1609_v60, %v1616_v59  ;;  %v1627_v2 = vsel %vm295_vm1, %v1626_v61, %v1601_v20 }
 0x509   :  { %v1625_v3 = vperm.slane %v1617_v1, %v2731_v44  ;;  %v1633_v52 = vperm.slane %v1627_v2, %v2731_v44  ;;  %v1644_v4 = vrot.slane %v1637_v63, 4 }
 0x50a   :  { %v1615_v5 = vsel %vm295_vm1, %v1614_v0, %v1597_v48  ;;  %v1588_v6 = vpop.f32.mrf.mxu2 }
 0x50b   :  { %v1621_v7 = vperm.slane %v1615_v5, %v2731_v44  ;;  %v1640_v8 = vrot.slane %v1625_v3, 4  ;;  %v1642_v9 = vrot.slane %v1633_v52, 4  ;;  %v1645_v10 = vsel %vm295_vm1, 0.0, %v1644_v4  ;;  %v2312_v6 = vld [vmem:[%s3343_s3] sm:$0xff] }
 0x50c   :  { %v1657_v13 = vsel %vm295_vm1, %v1644_v4, %v1633_v52  ;;  %v1662_v16 = vrot.slane %v1645_v10, 4  ;;  %v2257_v52 = vld [vmem:[%s3319_s11] ss:$0 sm:$0xff]  ;;  %v2313_v10 = vld [vmem:[%s3343_s3 + $0x8] sm:$0xff]  ;;  %s3346_s3 = sld [smem:[#allocation28_spill]] }
 0x50d   :  { %v1638_v11 = vrot.slane %v1621_v7, 4  ;;  %v1641_v17 = vsel %vm295_vm1, 0.0, %v1640_v8  ;;  %v1643_v56 = vsel %vm295_vm1, 0.0, %v1642_v9  ;;  %v1646_v12 = vsel %vm295_vm1, %v1640_v8, %v1621_v7 }
 0x50e   :  { %v1651_v18 = vrot.slane %v1641_v17, 4  ;;  %v1661_v25 = vperm.slane %v1657_v13, %v2722_v31  ;;  %v1663_v21 = vsel %vm295_vm1, %v1662_v16, %v1643_v56  ;;  %v1650_v22 = vperm.slane %v1646_v12, %v2722_v31 }
 0x50f   :  { %v1667_v15 = vperm.slane %v1663_v21, %v2722_v31  ;;  %v1639_v36 = vsel %vm295_vm1, 0.0, %v1638_v11  ;;  %v2535_v11 = vmov 32.0  }
 0x510   :  { %v1682_v24 = vrot.slane %v1661_v25, 4  ;;  %v1652_v27 = vsel %vm295_vm1, %v1651_v18, %v1639_v36  ;;  %v1670_v28 = vrot.slane %v1650_v22, 4  ;;  %2298 = vrcp.f32 %v2535_v11 }
 0x511   :  { %v1656_v33 = vperm.slane %v1652_v27, %v2722_v31  ;;  %v1680_v43 = vrot.slane %v1667_v15, 4 }
 0x512   :  { %v1683_v29 = vsel %vm295_vm1, %v1667_v15, %v1682_v24  ;;  %s2075_s4 = sshll.u32 %s3346_s3, 4  ;;  %s2076_s4 = int_to_ptr.hbm [resolvable:$true] %s2075_s4 }
 0x513   :  { %v1671_v34 = vsel %vm295_vm1, %v1656_v33, %v1670_v28  ;;  %v1691_v30 = vperm.slane %v1683_v29, %v2731_v44  ;;  %v1668_v47 = vrot.slane %v1656_v33, 4  ;;  %v1681_v54 = vsel %vm295_vm1, %v1680_v43, %v1661_v25 }
 0x514   :  { %v1679_v37 = vperm.slane %v1671_v34, %v2731_v44  ;;  %v1687_v38 = vperm.slane %v1681_v54, %v2731_v44 }
 0x515   :  { %v1696_v39 = vrot.slane %v1691_v30, 4  ;;  %v1669_v35 = vsel %vm295_vm1, %v1668_v47, %v1650_v22 }
 0x516   :  { %v1698_v40 = vrot.slane %v1679_v37, 4  ;;  %v1675_v31 = vperm.slane %v1669_v35, %v2731_v44  ;;  %v1692_v41 = vrot.slane %v1687_v38, 4  ;;  %v2299_v17 = vpop.eup %2298 }
 0x517   :  { %v1697_v14 = vsel %vm295_vm1, %v1696_v39, %v1679_v37  ;;  %v1774_v56 = vmul.f32 32.0, %v2299_v17  ;;  %vm1778_vm7 = vweird.f32 %v2299_v17  ;;  %v2198_v37 = vld [vmem:[#allocation11 + $0x8] sm:$0xff] }
 0x518   :  { %v2244_v42 = vpack.i.bf16 %v1697_v14, %v3071_v23  ;;  %v1699_v20 = vsel %vm295_vm1, %v1691_v30, %v1698_v40  ;;  %v1694_v45 = vrot.slane %v1675_v31, 4  ;;  %v1693_v46 = vsel %vm295_vm1, %v1692_v41, %v1675_v31  ;;  %v2195_v23 = vld [vmem:[#allocation10] sm:$0xff]  ;;  %1858 = vmatpush.bf16.msrb.mxu0 %v2198_v37 }
 0x519   :  { %v2249_v48 = vpack.i.bf16 %v1699_v20, %v3067_v19  ;;  %1756 = vmatpush.bf16.msra.mxu3 %v2195_v23  ;;  %v1775_v12 = vsub.f32 1.0, %v1774_v56 }
 0x51a   :  { %2245 = vrot.lane.b32.xlu0 %v2244_v42, %s2532_s9  ;;  %v1695_v49 = vsel %vm295_vm1, %v1687_v38, %v1694_v45  ;;  %v2197_v38 = vld [vmem:[#allocation11] sm:$0xff]  ;;  %s2536_s9 = smov [#allocation14]  }
 0x51b   :  { %2250 = vrot.lane.b32.xlu2 %v2249_v48, %s2533_s5  ;;  %v2239_v44 = vpack.i.bf16 %v1695_v49, %v3074_v26  ;;  %v1776_v18 = vmul.f32 %v2299_v17, %v1775_v12  ;;  %s2086_s5 = sshll.u32 %s2536_s9, 4  ;;  %s2087_s5 = int_to_ptr.vmem [resolvable:$true] %s2086_s5 }
 0x51c   :  { %1859 = vmatpush.bf16.msrb.mxu0 %v2197_v38  ;;  %2094 = dma.vmem_to_hbm [thread:$0]  %s2087_s5, 256, %s2089_s8, [#allocation15], %s2537_s0, %s2537_s0, %s2534_s29  }
 0x51d   :  { %2240 = vrot.lane.b32.xlu1 %v2239_v44, %s2534_s29  ;;  %v1777_v25 = vadd.f32 %v2299_v17, %v1776_v18 }
 0x51f   :  { %v3221_v21 = vsel %vm1778_vm7, %v2299_v17, %v1777_v25  ;;  %vm1991_vm7 = vcmask 523264  }
 0x575   :  { %v2251_v50 = vpop.permute.xlu2 %2250 }
 0x576   :  { %v2253_v60 = vunpack.i.h.bf16 %v2251_v50  ;;  %v2252_v61 = vunpack.i.l.bf16 %v2251_v50 }
 0x58c   :  { %v2246_v53 = vpop.permute.xlu0 %2245 }
 0x58d   :  { %v2248_v58 = vunpack.i.h.bf16 %v2246_v53  ;;  %v2247_v59 = vunpack.i.l.bf16 %v2246_v53  ;;  %v2258_v53 = vld [vmem:[%s3324_s16] ss:$0 sm:$0xff] }
 0x58f   :  { %v2241_v55 = vpop.permute.xlu1 %2240 }
 0x590   :  { %v2243_v19 = vunpack.i.h.bf16 %v2241_v55  ;;  %v2242_v57 = vunpack.i.l.bf16 %v2241_v55 }
 0x592   :  { %v989_v26 = vsel %vm653_vm2, %v3078_v32, %v2242_v57  ;;  %v1712_v62 = vsel %vm653_vm2, %v1693_v46, %v2243_v19  ;;  %v2259_v57 = vld [vmem:[%s3325_s17] ss:$0 sm:$0xff] }
 0x593   :  { %v991_v63 = vsel %vm990_vm5, %v989_v26, %v2247_v59  ;;  %v1713_v0 = vsel %vm990_vm5, %v1712_v62, %v2248_v58 }
 0x594   :  { %v993_v1 = vsel %vm992_vm6, %v991_v63, %v2252_v61  ;;  %v1714_v2 = vsel %vm992_vm6, %v1713_v0, %v2253_v60  ;;  %v2260_v63 = vld [vmem:[%s3321_s13] ss:$0 sm:$0xff] }
 0x595   :  { %v1725_v3 = vpack.c.bf16 %v1714_v2, %v993_v1 }
 0x597   :  { %2160 = vmatmul.msk.bf16.vlgmr.msra.gmra.mxu3 %vm190_vm0, %v1725_v3 }
 0x61a   :  { %v1758_v4 = vpop.f32.mrf.mxu3 }
 0x61b   :  { %v1759_v5 = vadd.f32 %v2257_v52, %v1758_v4 }
 0x61d   :  { %v1763_v32 = vadd.f32 %v2312_v6, %v1759_v5 }
 0x61f   :  { %v1767_v7 = vsel %vm190_vm0, %v1763_v32, 0.0 }
 0x620   :  { %1768 = vadd.xlane.f32.xlu1 %v1767_v7 }
 0x622   :  { %v1760_v8 = vpop.f32.mrf.mxu3 }
 0x623   :  { %v1761_v9 = vadd.f32 %v2257_v52, %v1760_v8 }
 0x625   :  { %v1764_v13 = vadd.f32 %v2313_v10, %v1761_v9 }
 0x627   :  { %v1770_v16 = vsel %vm190_vm0, %v1764_v13, 0.0 }
 0x628   :  { %1771 = vadd.xlane.f32.xlu0 %v1770_v16 }
 0x693   :  { %v1769_v22 = vpop.xlane.xlu1 %1768 }
 0x694   :  { %v1780_v15 = vmul.f32 %v3221_v21, %v1769_v22 }
 0x696   :  { %v1782_v36 = vsub.f32 %v1763_v32, %v1780_v15 }
 0x698   :  { %v1784_v24 = vmul.f32 %v1782_v36, %v1782_v36 }
 0x69a   :  { %v1786_v27 = vsel %vm190_vm0, %v1784_v24, 0.0 }
 0x69b   :  { %v1772_v28 = vpop.xlane.xlu0 %1771  ;;  %1787 = vadd.xlane.f32.xlu2 %v1786_v27 }
 0x69c   :  { %v1781_v33 = vmul.f32 %v3221_v21, %v1772_v28 }
 0x69e   :  { %v1783_v43 = vsub.f32 %v1764_v13, %v1781_v33 }
 0x6a0   :  { %v1785_v29 = vmul.f32 %v1783_v43, %v1783_v43 }
 0x6a2   :  { %v1789_v34 = vsel %vm190_vm0, %v1785_v29, 0.0 }
 0x6a3   :  { %1790 = vadd.xlane.f32.xlu1 %v1789_v34 }
 0x70e   :  { %v1788_v30 = vpop.xlane.xlu2 %1787 }
 0x70f   :  { %v1792_v47 = vmul.f32 %v1788_v30, %v3221_v21 }
 0x711   :  { %v1794_v54 = vadd.f32 1e-05, %v1792_v47 }
 0x713   :  { %2300 = vrsqrt.f32 %v1794_v54  ;;  %vm1802_vm9 = vweird.f32 %v1794_v54 }
 0x716   :  { %v1791_v39 = vpop.xlane.xlu1 %1790 }
 0x717   :  { %v1793_v35 = vmul.f32 %v1791_v39, %v3221_v21 }
 0x719   :  { %v2301_v40 = vpop.eup %2300  ;;  %v1795_v31 = vadd.f32 1e-05, %v1793_v35 }
 0x71a   :  { %v1797_v41 = vmul.f32 %v2301_v40, %v1794_v54  ;;  %vm1803_vm8 = vweird.f32 %v2301_v40 }
 0x71b   :  { %2302 = vrsqrt.f32 %v1795_v31  ;;  %vm1804_vm10 = vmor %vm1802_vm9, %vm1803_vm8  ;;  %vm1812_vm12 = vweird.f32 %v1795_v31 }
 0x71c   :  { %v1798_v14 = vmul.f32 %v2301_v40, %v1797_v41 }
 0x71e   :  { %v1799_v42 = vmul.f32 0.5, %v1798_v14 }
 0x720   :  { %v1800_v20 = vsub.f32 1.5, %v1799_v42  ;;  %v2201_v42 = vld [vmem:[%s3322_s14 + $0x10] sm:$0xff] }
 0x721   :  { %v2303_v45 = vpop.eup %2302 }
 0x722   :  { %v1801_v46 = vmul.f32 %v2301_v40, %v1800_v20  ;;  %v1807_v48 = vmul.f32 %v2303_v45, %v1795_v31  ;;  %vm1813_vm11 = vweird.f32 %v2303_v45  ;;  %v2202_v31 = vld [vmem:[%s3322_s14 + $0x18] sm:$0xff] }
 0x723   :  { %vm1814_vm13 = vmor %vm1812_vm12, %vm1813_vm11  ;;  %1999 = vmatpush.bf16.msrb.mxu1 %v2202_v31 }
 0x724   :  { %v1808_v49 = vmul.f32 %v2303_v45, %v1807_v48  ;;  %v1805_v44 = vsel %vm1804_vm10, %v2301_v40, %v1801_v46 }
 0x725   :  { %v1816_v50 = vmul.f32 %v1805_v44, %v1782_v36 }
 0x726   :  { %v1809_v51 = vmul.f32 0.5, %v1808_v49 }
 0x727   :  { %v1821_v58 = vmul.f32 %v2258_v53, %v1816_v50  ;;  %2000 = vmatpush.bf16.msrb.mxu1 %v2201_v42 }
 0x728   :  { %v1810_v23 = vsub.f32 1.5, %v1809_v51  ;;  %v2200_v51 = vld [vmem:[%s3322_s14 + $0x8] sm:$0xff] }
 0x729   :  { %v3235_v61 = vadd.f32 %v2259_v57, %v1821_v58  ;;  %v2199_v58 = vld [vmem:[%s3322_s14] sm:$0xff] }
 0x72a   :  { %v1811_v55 = vmul.f32 %v2303_v45, %v1810_v23 }
 0x72b   :  { %2001 = vmatpush.bf16.msrb.mxu1 %v2200_v51 }
 0x72c   :  { %v1815_v19 = vsel %vm1814_vm13, %v2303_v45, %v1811_v55 }
 0x72d   :  { %v1817_v59 = vmul.f32 %v1815_v19, %v1783_v43 }
 0x72f   :  { %v1822_v60 = vmul.f32 %v2258_v53, %v1817_v59  ;;  %2002 = vmatpush.bf16.msrb.mxu1 %v2199_v58 }
 0x731   :  { %v3237_v26 = vadd.f32 %v2259_v57, %v1822_v60 }
 0x733   :  { %v1828_v62 = vpack.c.bf16 %v3237_v26, %v3235_v61 }
 0x735   :  { %2169 = vmatmul.msk.bf16.vlgmr.msrb.gmra.mxu0 %vm190_vm0, %v1828_v62 }
 0x7b2   :  { %v1861_v0 = vpop.f32.mrf.mxu0 }
 0x7b3   :  { %v3245_v1 = vadd.f32 %v2260_v63, %v1861_v0 }
 0x7b5   :  { %v3248_v2 = vmul.f32 0.70710677, %v3245_v1 }
 0x7b7   :  { %v1870_v3 = vmul.f32 %v3248_v2, %v3248_v2 }
 0x7b9   :  { %v1871_v52 = vmin.f32 %v1870_v3, 16.0 }
 0x7ba   :  { %v1863_v4 = vpop.f32.mrf.mxu0 }
 0x7bb   :  { %v1872_v5 = vmul.f32 2.1237322e-06, %v1871_v52  ;;  %v1883_v6 = vmul.f32 3.8918573e-05, %v1871_v52  ;;  %v3252_v32 = vadd.f32 %v2260_v63, %v1863_v4 }
 0x7bd   :  { %v1873_v7 = vadd.f32 0.00028619796, %v1872_v5  ;;  %v1884_v8 = vadd.f32 0.001143296, %v1883_v6  ;;  %v3255_v9 = vmul.f32 0.70710677, %v3252_v32 }
 0x7bf   :  { %v1885_v10 = vmul.f32 %v1884_v8, %v1871_v52  ;;  %v1910_v13 = vmul.f32 %v3255_v9, %v3255_v9  ;;  %v1874_v16 = vmul.f32 %v1873_v7, %v1871_v52 }
 0x7c1   :  { %v1886_v11 = vadd.f32 0.014752088, %v1885_v10  ;;  %v1911_v17 = vmin.f32 %v1910_v13, 16.0  ;;  %v1875_v25 = vadd.f32 0.0036580483, %v1874_v16 }
 0x7c3   :  { %v1887_v56 = vmul.f32 %v1886_v11, %v1871_v52  ;;  %v1912_v12 = vmul.f32 2.1237322e-06, %v1911_v17  ;;  %v1923_v18 = vmul.f32 3.8918573e-05, %v1911_v17  ;;  %v1876_v33 = vmul.f32 %v1875_v25, %v1871_v52 }
 0x7c5   :  { %v1888_v22 = vadd.f32 0.112945676, %v1887_v56  ;;  %v1913_v15 = vadd.f32 0.00028619796, %v1912_v12  ;;  %v1924_v36 = vadd.f32 0.001143296, %v1923_v18 }
 0x7c6   :  { %v1877_v54 = vadd.f32 0.05243302, %v1876_v33 }
 0x7c7   :  { %v1889_v24 = vmul.f32 %v1888_v22, %v1871_v52  ;;  %v1914_v27 = vmul.f32 %v1913_v15, %v1911_v17  ;;  %v1925_v28 = vmul.f32 %v1924_v36, %v1911_v17  ;;  %v1866_v36 = vmul.f32 0.5, %v3245_v1 }
 0x7c8   :  { %v1878_v40 = vmul.f32 %v1877_v54, %v1871_v52 }
 0x7c9   :  { %v1890_v43 = vadd.f32 0.4994258, %v1889_v24  ;;  %v1915_v29 = vadd.f32 0.0036580483, %v1914_v27  ;;  %v1926_v34 = vadd.f32 0.014752088, %v1925_v28 }
 0x7ca   :  { %v1879_v46 = vadd.f32 0.18741608, %v1878_v40  ;;  %v1867_v24 = vmul.f32 0.5, %v3252_v32 }
 0x7cb   :  { %v1891_v30 = vmul.f32 %v1890_v43, %v1871_v52  ;;  %v1927_v47 = vmul.f32 %v1926_v34, %v1911_v17  ;;  %v1916_v38 = vmul.f32 %v1915_v29, %v1911_v17 }
 0x7cc   :  { %v1880_v53 = vmul.f32 %v1879_v46, %v1871_v52 }
 0x7cd   :  { %v1892_v37 = vadd.f32 1.0, %v1891_v30  ;;  %v1928_v39 = vadd.f32 0.112945676, %v1927_v47  ;;  %v1917_v41 = vadd.f32 0.05243302, %v1916_v38 }
 0x7ce   :  { %v1881_v60 = vadd.f32 1.1283791, %v1880_v53 }
 0x7cf   :  { %2304 = vrcp.f32 %v1892_v37  ;;  %v1929_v35 = vmul.f32 %v1928_v39, %v1911_v17  ;;  %v1918_v49 = vmul.f32 %v1917_v41, %v1911_v17  ;;  %v1904_v55 = vand.u32 2147483648, %v1892_v37 }
 0x7d0   :  { %v1902_v57 = vand.u32 2147483647, %v1892_v37  ;;  %vm1898_vm15 = vweird.f32 %v1892_v37  ;;  %v1882_v5 = vmul.f32 %v1881_v60, %v3248_v2 }
 0x7d1   :  { %v1930_v14 = vadd.f32 0.4994258, %v1929_v35  ;;  %v1919_v19 = vadd.f32 0.18741608, %v1918_v49  ;;  %v1905_v0 = vor.u32 1.1754944e-38, %v1904_v55 }
 0x7d2   :  { %vm1903_vm2 = vcmp.eq.f32.partialorder %v1902_v57, 8.507059e+37 }
 0x7d3   :  { %v1931_v20 = vmul.f32 %v1930_v14, %v1911_v17  ;;  %v1920_v3 = vmul.f32 %v1919_v19, %v1911_v17 }
 0x7d5   :  { %v2305_v45 = vpop.eup %2304  ;;  %v1932_v44 = vadd.f32 1.0, %v1931_v20  ;;  %v1921_v7 = vadd.f32 1.1283791, %v1920_v3 }
 0x7d6   :  { %v1894_v48 = vmul.f32 %v2305_v45, %v1892_v37  ;;  %vm1899_vm14 = vweird.f32 %v2305_v45 }
 0x7d7   :  { %2306 = vrcp.f32 %v1932_v44  ;;  %vm1900_vm1 = vmor %vm1898_vm15, %vm1899_vm14  ;;  %v1944_v8 = vand.u32 2147483648, %v1932_v44  ;;  %v1942_v16 = vand.u32 2147483647, %v1932_v44  ;;  %vm1938_vm4 = vweird.f32 %v1932_v44 }
 0x7d8   :  { %v1895_v23 = vsub.f32 1.0, %v1894_v48  ;;  %v1922_v17 = vmul.f32 %v1921_v7, %v3255_v9  ;;  %v2261_v9 = vld [vmem:[%s3323_s15] ss:$0 sm:$0xff] }
 0x7d9   :  { %v1945_v56 = vor.u32 1.1754944e-38, %v1944_v8  ;;  %vm1943_vm6 = vcmp.eq.f32.partialorder %v1942_v16, 8.507059e+37 }
 0x7da   :  { %v1896_v50 = vmul.f32 %v2305_v45, %v1895_v23 }
 0x7dc   :  { %v1897_v59 = vadd.f32 %v2305_v45, %v1896_v50 }
 0x7dd   :  { %v2307_v62 = vpop.eup %2306 }
 0x7de   :  { %v1901_v63 = vsel %vm1900_vm1, %v2305_v45, %v1897_v59  ;;  %v1934_v52 = vmul.f32 %v2307_v62, %v1932_v44  ;;  %vm1939_vm3 = vweird.f32 %v2307_v62  ;;  %v2262_v59 = vld [vmem:[%s3326_s18] ss:$0 sm:$0xff]  ;;  %s2538_s18 = smov [#allocation13]  }
 0x7df   :  { %v1906_v4 = vsel %vm1903_vm2, %v1905_v0, %v1901_v63  ;;  %vm1940_vm5 = vmor %vm1938_vm4, %vm1939_vm3  ;;  %s2073_s1 = sshll.u32 %s2538_s18, 4  ;;  %s2074_s1 = int_to_ptr.vmem [resolvable:$true] %s2073_s1 }
 0x7e0   :  { %v1935_v6 = vsub.f32 1.0, %v1934_v52  ;;  %v1907_v10 = vmul.f32 %v1906_v4, %v1882_v5 }
 0x7e2   :  { %v1936_v13 = vmul.f32 %v2307_v62, %v1935_v6  ;;  %v2170_v12 = vclamps-f32 %v1907_v10, 1.0 }
 0x7e4   :  { %v1937_v11 = vadd.f32 %v2307_v62, %v1936_v13  ;;  %v1950_v15 = vadd.f32 1.0, %v2170_v12 }
 0x7e6   :  { %v1941_v18 = vsel %vm1940_vm5, %v2307_v62, %v1937_v11  ;;  %v1952_v28 = vmul.f32 %v1950_v15, %v1866_v36 }
 0x7e7   :  { %v1946_v25 = vsel %vm1943_vm6, %v1945_v56, %v1941_v18 }
 0x7e8   :  { %v1947_v22 = vmul.f32 %v1946_v25, %v1922_v17 }
 0x7ea   :  { %v2171_v2 = vclamps-f32 %v1947_v22, 1.0 }
 0x7ec   :  { %v1951_v27 = vadd.f32 1.0, %v2171_v2 }
 0x7ee   :  { %v1953_v33 = vmul.f32 %v1951_v27, %v1867_v24 }
 0x7f0   :  { %v1954_v43 = vpack.c.bf16 %v1953_v33, %v1952_v28 }
 0x7f2   :  { %2188 = vmatmul.msk.bf16.vlgmr.msrb.gmra.mxu1 %vm1991_vm7, %v1954_v43 }
 0x86f   :  { %v2004_v29 = vpop.f32.mrf.mxu1 }
 0x870   :  { %v2005_v34 = vadd.f32 %v2261_v9, %v2004_v29 }
 0x872   :  { %v2009_v30 = vadd.f32 %v2005_v34, %v3235_v61 }
 0x874   :  { %v2013_v47 = vsel %vm190_vm0, %v2009_v30, 0.0 }
 0x875   :  { %2014 = vadd.xlane.f32.xlu0 %v2013_v47 }
 0x877   :  { %v2006_v1 = vpop.f32.mrf.mxu1 }
 0x878   :  { %v2007_v54 = vadd.f32 %v2261_v9, %v2006_v1 }
 0x87a   :  { %v2010_v32 = vadd.f32 %v2007_v54, %v3237_v26 }
 0x87c   :  { %v2016_v37 = vsel %vm190_vm0, %v2010_v32, 0.0 }
 0x87d   :  { %2017 = vadd.xlane.f32.xlu1 %v2016_v37 }
 0x8e8   :  { %v2015_v38 = vpop.xlane.xlu0 %2014 }
 0x8e9   :  { %v2019_v39 = vmul.f32 %v2015_v38, %v3221_v21 }
 0x8eb   :  { %v2021_v35 = vsub.f32 %v2009_v30, %v2019_v39 }
 0x8ed   :  { %v2023_v40 = vmul.f32 %v2021_v35, %v2021_v35 }
 0x8ef   :  { %v2025_v31 = vsel %vm190_vm0, %v2023_v40, 0.0 }
 0x8f0   :  { %v2018_v41 = vpop.xlane.xlu1 %2017  ;;  %2026 = vadd.xlane.f32.xlu0 %v2025_v31 }
 0x8f1   :  { %v2020_v61 = vmul.f32 %v2018_v41, %v3221_v21 }
 0x8f3   :  { %v2022_v14 = vsub.f32 %v2010_v32, %v2020_v61 }
 0x8f5   :  { %v2024_v42 = vmul.f32 %v2022_v14, %v2022_v14 }
 0x8f7   :  { %v2028_v20 = vsel %vm190_vm0, %v2024_v42, 0.0 }
 0x8f8   :  { %2029 = vadd.xlane.f32.xlu2 %v2028_v20 }
 0x963   :  { %v2027_v26 = vpop.xlane.xlu0 %2026 }
 0x964   :  { %v2031_v45 = vmul.f32 %v2027_v26, %v3221_v21 }
 0x966   :  { %v2033_v46 = vadd.f32 1e-05, %v2031_v45 }
 0x968   :  { %2308 = vrsqrt.f32 %v2033_v46  ;;  %vm2041_vm9 = vweird.f32 %v2033_v46 }
 0x96b   :  { %v2030_v48 = vpop.xlane.xlu2 %2029 }
 0x96c   :  { %v2032_v49 = vmul.f32 %v2030_v48, %v3221_v21  ;;  %v2263_v21 = vld [vmem:[%s3327_s19] ss:$0 sm:$0xff] }
 0x96e   :  { %v2309_v44 = vpop.eup %2308  ;;  %v2034_v51 = vadd.f32 1e-05, %v2032_v49 }
 0x96f   :  { %v2036_v23 = vmul.f32 %v2309_v44, %v2033_v46  ;;  %vm2042_vm8 = vweird.f32 %v2309_v44 }
 0x970   :  { %2310 = vrsqrt.f32 %v2034_v51  ;;  %vm2043_vm10 = vmor %vm2041_vm9, %vm2042_vm8  ;;  %vm2051_vm12 = vweird.f32 %v2034_v51 }
 0x971   :  { %v2037_v53 = vmul.f32 %v2309_v44, %v2036_v23 }
 0x973   :  { %v2038_v50 = vmul.f32 0.5, %v2037_v53 }
 0x975   :  { %v2039_v55 = vsub.f32 1.5, %v2038_v50 }
 0x976   :  { %v2311_v19 = vpop.eup %2310 }
 0x977   :  { %v2040_v57 = vmul.f32 %v2309_v44, %v2039_v55  ;;  %v2046_v58 = vmul.f32 %v2311_v19, %v2034_v51  ;;  %vm2052_vm11 = vweird.f32 %v2311_v19 }
 0x978   :  { %vm2053_vm13 = vmor %vm2051_vm12, %vm2052_vm11 }
 0x979   :  { %v2044_v60 = vsel %vm2043_vm10, %v2309_v44, %v2040_v57  ;;  %v2047_v62 = vmul.f32 %v2311_v19, %v2046_v58 }
 0x97a   :  { %v2055_v63 = vmul.f32 %v2044_v60, %v2021_v35 }
 0x97b   :  { %v2048_v0 = vmul.f32 0.5, %v2047_v62 }
 0x97c   :  { %v2060_v3 = vmul.f32 %v2262_v59, %v2055_v63 }
 0x97d   :  { %v2049_v52 = vsub.f32 1.5, %v2048_v0 }
 0x97e   :  { %v2065_v4 = vadd.f32 %v2263_v21, %v2060_v3 }
 0x97f   :  { %v2050_v5 = vmul.f32 %v2311_v19, %v2049_v52 }
 0x980   :  { %2067 = vst.msk [vmem:[#allocation13] sm:$0xff] %vm190_vm0, %v2065_v4 }
 0x981   :  { %v2054_v6 = vsel %vm2053_vm13, %v2311_v19, %v2050_v5 }
 0x982   :  { %v2056_v7 = vmul.f32 %v2054_v6, %v2022_v14 }
 0x984   :  { %v2061_v8 = vmul.f32 %v2262_v59, %v2056_v7 }
 0x986   :  { %v2066_v10 = vadd.f32 %v2263_v21, %v2061_v8 }
 0x988   :  { %2068 = vst.msk [vmem:[#allocation13 + $0x8] sm:$0xff] %vm190_vm0, %v2066_v10 }
 0x989   :  { %2081 = dma.vmem_to_hbm [thread:$0]  %s2074_s1, 256, %s2076_s4, [#allocation4], %s2537_s0, %s2537_s0, %s2534_s29  }
 0x98a   :  { %2514 = dma.done.wait [#allocation4], 256  }
 0x98b   :  { %2515 = vsyncadd [#allocation4], 4294967040 }
 0x98c   :  { %2516 = dma.done.wait [#allocation15], 256  }
 0x98d   :  { %2517 = vsyncadd [#allocation15], 4294967040 }
 0x98e   :  { %2103 = vsyncpa [#allocation3], 1 }
 0x98f   :  { %2104 = vsyncpa [#allocation6], 1 }
 0x990   :  { %2105 = vsyncpa [#allocation9], 1 }
 0x991   :  { %2106 = vsyncpa [#allocation12], 1 }
 0x992   :  { %2107 = vsyncpa [#allocation4], 1 }
 0x993   :  { %2108 = vsyncpa [#allocation15], 1 }

</bundles_post_ra>
